<compile_context>
chip_gen: v5e
topology: v5e:2x2
jax: 0.10.0
libtpu: 0.0.40
codegen_flags: <defaults>
</compile_context>

<pallas_src>
import functools

import numpy as np

import jax
import jax.numpy as jnp
from jax.experimental import pallas as pl
from jax.experimental.pallas import tpu as pltpu


# ---------------------------------------------------------------------------
# Static (numpy) selection tensors used to fold spatial taps / pooling /
# pixel-shuffle into lane-space matrices.  Lane order everywhere: (c, h, w).
# ---------------------------------------------------------------------------
def _band(n, k, pad):
    """S[i, d, o] = 1  iff  i == o + d - pad   ('same', zero-padded conv band)."""
    i = np.arange(n)[:, None, None]
    d = np.arange(k)[None, :, None]
    o = np.arange(n)[None, None, :]
    return (i == o + d - pad).astype(np.float32)


def _pool_sel(n_in, factor):
    """S[i, o] = 1  iff  o == i // factor   (non-overlapping pooling)."""
    i = np.arange(n_in)[:, None]
    o = np.arange(n_in // factor)[None, :]
    return (o == i // factor).astype(np.float32)


def _upsample_sel(n_in, factor):
    """S[i, d, o] = 1  iff  o == factor*i + d   (transpose-conv pixel shuffle)."""
    i = np.arange(n_in)[:, None, None]
    d = np.arange(factor)[None, :, None]
    o = np.arange(n_in * factor)[None, None, :]
    return (o == factor * i + d).astype(np.float32)


def _temporal_pool_select(n_b, n_t):
    """Row-selection matrix for the temporal half of avg_pool3d(2,2,2) plus the
    causal prev/curr frame selection for the stage-B taps.
      rows [0 : B*T2)      -> previous pooled frame (zero row at t2 == 0)
      rows [B*T2 : 2*B*T2) -> current pooled frame
    Entries are 0.5 (temporal mean of frame pairs), applied to the (b, t) row axis.
    """
    n_t2 = n_t // 2
    nb = n_b * n_t2
    s = np.zeros((2 * nb, n_b * n_t), np.float32)
    for b in range(n_b):
        for t2 in range(n_t2):
            rb = b * n_t2 + t2
            s[nb + rb, b * n_t + 2 * t2] = 0.5
            s[nb + rb, b * n_t + 2 * t2 + 1] = 0.5
            if t2 > 0:
                s[rb, b * n_t + 2 * (t2 - 1)] = 0.5
                s[rb, b * n_t + 2 * (t2 - 1) + 1] = 0.5
    return s


def _fold_bn(bias, bn, eps=1e-5):
    gamma, beta, mean, var = bn
    scale = gamma / jnp.sqrt(var + eps)
    shift = beta - mean * scale
    return scale, bias * scale + shift


# ---------------------------------------------------------------------------
# One-time weight folding (NOT in the per-call path).
# ---------------------------------------------------------------------------
def fold_retina_params(params, *, T, B, H, W):
    f32, bf16 = jnp.float32, jnp.bfloat16
    K1, b1 = params["grp_tempo_w"], params["grp_tempo_b"]
    K2, b2 = params["conv_w"], params["conv_b"]
    K3, b3 = params["tempo3d_w"], params["tempo3d_b"]
    KT, bT = params["trans_w"], params["trans_b"]
    KP, bP = params["post_w"], params["post_b"]

    C1, C = K1.shape[0], K1.shape[1]
    C2, C3 = K2.shape[0], K3.shape[0]
    C4, C5 = KT.shape[1], KP.shape[0]
    assert K1.shape == (C1, C, 2, 1, 1)
    assert K2.shape == (C2, C1, 1, 3, 3)
    assert K3.shape == (C3, C2, 2, 3, 3)
    assert KT.shape == (C3, C4, 1, 2, 2)
    assert KP.shape == (C5, C4, 1, 3, 3)
    assert T % 2 == 0 and H % 4 == 0 and W % 4 == 0

    H2, W2 = H // 2, W // 2          # after avg_pool3d(1,2,2)
    H4, W4 = H2 // 2, W2 // 2        # after avg_pool3d(2,2,2)
    Ho, Wo = 2 * H4, 2 * W4          # after CausalTranspose3d (== H2, W2)

    s2, bias2 = _fold_bn(b2, params["conv_bn"])
    sT, biasT = _fold_bn(bT, params["trans_bn"])
    sP, biasP = _fold_bn(bP, params["post_bn"])

    eye_h2 = np.eye(H2, dtype=np.float32)
    eye_w2 = np.eye(W2, dtype=np.float32)
    band_h2, band_w2 = _band(H2, 3, 1), _band(W2, 3, 1)
    band_h4, band_w4 = _band(H4, 3, 1), _band(W4, 3, 1)
    band_ho, band_wo = _band(Ho, 3, 1), _band(Wo, 3, 1)

    # WA1: causal TemporalConv3d(2,1,1); both taps K-stacked along the input lane
    # axis (lanes [0 : C*H2*W2) = frame t-1 / tap d=0, rest = frame t / tap d=1).
    WA1 = jnp.einsum("ocd,yY,xX->dcyxoYX", K1[:, :, :, 0, 0], eye_h2, eye_w2)
    WA1 = WA1.reshape(2 * C * H2 * W2, C1 * H2 * W2).astype(bf16)
    bA1 = jnp.repeat(b1, H2 * W2)[None, :].astype(f32)

    # WA2: Conv3d(1,3,3) 'same', BN folded.
    WA2 = jnp.einsum("ocde,ydY,xeX->cyxoYX",
                     K2[:, :, 0] * s2[:, None, None, None], band_h2, band_w2)
    WA2 = WA2.reshape(C1 * H2 * W2, C2 * H2 * W2).astype(bf16)
    bA2 = jnp.repeat(bias2, H2 * W2)[None, :].astype(f32)

    # P2: spatial (h,w) half of avg_pool3d(2,2,2).
    P2 = 0.25 * jnp.einsum("cC,yY,xX->cyxCYX", np.eye(C2, dtype=np.float32),
                           _pool_sel(H2, 2), _pool_sel(W2, 2))
    P2 = P2.reshape(C2 * H2 * W2, C2 * H4 * W4).astype(bf16)

    # SP: temporal half of avg_pool3d(2,2,2) + causal prev/curr selection (rows).
    SP = jnp.asarray(_temporal_pool_select(B, T), dtype=f32)

    # WB1: tempo3d causal Conv3d(2,3,3), one (K, N) matrix per causal tap.
    WB1 = jnp.einsum("ocade,ydY,xeX->acyxoYX", K3, band_h4, band_w4)
    WB1 = WB1.reshape(2, C2 * H4 * W4, C3 * H4 * W4).astype(bf16)
    bB1 = jnp.repeat(b3, H4 * W4)[None, :].astype(f32)

    # WB2: ConvTranspose3d kernel==stride==(1,2,2), BN folded; 2x2 pixel shuffle
    # is encoded in the output lane layout.
    WB2 = jnp.einsum("code,ydY,xeX->cyxoYX",
                     KT[:, :, 0] * sT[None, :, None, None],
                     _upsample_sel(H4, 2), _upsample_sel(W4, 2))
    WB2 = WB2.reshape(C3 * H4 * W4, C4 * Ho * Wo).astype(bf16)
    bB2 = jnp.repeat(biasT, Ho * Wo)[None, :].astype(f32)

    # WB3: post Conv3d(1,3,3) 'same', BN folded.
    WB3 = jnp.einsum("ocde,ydY,xeX->cyxoYX",
                     KP[:, :, 0] * sP[:, None, None, None], band_ho, band_wo)
    WB3 = WB3.reshape(C4 * Ho * Wo, C5 * Ho * Wo).astype(bf16)
    bB3 = jnp.repeat(biasP, Ho * Wo)[None, :].astype(f32)

    return {"WA1": WA1, "bA1": bA1, "WA2": WA2, "bA2": bA2, "P2": P2, "SP": SP,
            "WB1": WB1, "bB1": bB1, "WB2": WB2, "bB2": bB2, "WB3": WB3, "bB3": bB3}


# ---------------------------------------------------------------------------
# The single fused Pallas kernel.
#   rows  = (batch, time)           lanes = (channel, h, w)
# ---------------------------------------------------------------------------
def _retina_fused_kernel(xa_ref, sp_ref, wa1_ref, ba1_ref, wa2_ref, ba2_ref,
                         p2_ref, wb1_ref, bb1_ref, wb2_ref, bb2_ref,
                         wb3_ref, bb3_ref, out_ref, *, n_rows_b):
    f32, bf16 = jnp.float32, jnp.bfloat16

    # Stage A1: causal TemporalConv3d(2,1,1) + ReLU.  Both causal taps are already
    # K-stacked along the input lanes (prev | curr), so this is one MXU matmul.
    h1 = jnp.dot(xa_ref[...], wa1_ref[...], preferred_element_type=f32)
    h1 = jnp.maximum(h1 + ba1_ref[...], 0.0)

    # Stage A2: Conv3d(1,3,3) + BN (folded) + tanh.
    h2 = jnp.tanh(jnp.dot(h1.astype(bf16), wa2_ref[...],
                          preferred_element_type=f32) + ba2_ref[...])

    # avg_pool3d(2,2,2): spatial half as a lane-space pooling matmul.
    hp = jnp.dot(h2.astype(bf16), p2_ref[...], preferred_element_type=f32)

    # avg_pool3d(2,2,2): temporal half + causal prev/curr frame selection for
    # stage B, vectorized as ONE tiny row-selection matmul (no VMEM scratch, no
    # masked single-row stores, no cross-batch leakage).  Slices are 8-row aligned.
    sel = jnp.dot(sp_ref[...], hp, preferred_element_type=f32)
    xb_prev = sel[0:n_rows_b, :].astype(bf16)
    xb_curr = sel[n_rows_b:2 * n_rows_b, :].astype(bf16)

    # Stage B1: causal TemporalConv3d(2,3,3) + ReLU.
    g1 = (jnp.dot(xb_prev, wb1_ref[0], preferred_element_type=f32)
          + jnp.dot(xb_curr, wb1_ref[1], preferred_element_type=f32))
    g1 = jnp.maximum(g1 + bb1_ref[...], 0.0)

    # Stage B2: CausalTranspose3d kernel==stride==(1,2,2) + BN (folded) + tanh.
    g2 = jnp.tanh(jnp.dot(g1.astype(bf16), wb2_ref[...],
                          preferred_element_type=f32) + bb2_ref[...])

    # Stage B3: post Conv3d(1,3,3) + BN (folded) + tanh.
    g3 = jnp.tanh(jnp.dot(g2.astype(bf16), wb3_ref[...],
                          preferred_element_type=f32) + bb3_ref[...])

    # Single contiguous writeback (no pad rows, no per-batch copies).
    out_ref[...] = g3


# ---------------------------------------------------------------------------
# Forward pass (mirrors RetinaDecoder.forward); X: (T, B, C, H, W)
# ---------------------------------------------------------------------------
def retina_decoder_forward(X, folded):
    f32, bf16 = jnp.float32, jnp.bfloat16
    T, B, C, H, W = X.shape
    H2, W2, T2 = H // 2, W // 2, T // 2
    Ho, Wo = H2, W2
    lanes_out = folded["WB3"].shape[1]
    C5 = lanes_out // (Ho * Wo)

    # ---- input packing (tiny XLA ops on a ~128 KiB activation) --------------
    # avg_pool3d(1,2,2) + (c,h,w) lane packing + causal prev/curr K-stacking.
    xp = X.reshape(T, B, C, H2, 2, W2, 2).mean(axis=(4, 6))        # (T,B,C,H2,W2)
    xp = jnp.transpose(xp, (1, 0, 2, 3, 4)).reshape(B, T, C * H2 * W2)
    x_prev = jnp.pad(xp, ((0, 0), (1, 0), (0, 0)))[:, :T]          # frame t-1 (0 @ t=0)
    xa = jnp.concatenate([x_prev, xp], axis=-1)
    xa = xa.reshape(B * T, 2 * C * H2 * W2).astype(bf16)

    m_a, m_b = B * T, B * T2
    WA1, WA2, P2, SP = folded["WA1"], folded["WA2"], folded["P2"], folded["SP"]
    WB1, WB2, WB3 = folded["WB1"], folded["WB2"], folded["WB3"]

    flops = 2 * (m_a * WA1.shape[0] * WA1.shape[1]
                 + m_a * WA2.shape[0] * WA2.shape[1]
                 + m_a * P2.shape[0] * P2.shape[1]
                 + SP.shape[0] * SP.shape[1] * P2.shape[1]
                 + 2 * m_b * WB1.shape[1] * WB1.shape[2]
                 + m_b * WB2.shape[0] * WB2.shape[1]
                 + m_b * WB3.shape[0] * WB3.shape[1])
    transcendentals = m_a * WA2.shape[1] + m_b * WB2.shape[1] + m_b * WB3.shape[1]

    operands = (xa, SP, WA1, folded["bA1"], WA2, folded["bA2"], P2,
                WB1, folded["bB1"], WB2, folded["bB2"], WB3, folded["bB3"])
    bytes_accessed = (sum(int(np.prod(o.shape)) * o.dtype.itemsize for o in operands)
                      + m_b * lanes_out * 4)

    out = pl.pallas_call(
        functools.partial(_retina_fused_kernel, n_rows_b=m_b),
        out_shape=jax.ShapeDtypeStruct((m_b, lanes_out), f32),
        compiler_params=pltpu.CompilerParams(vmem_limit_bytes=8 * 1024 * 1024),
        cost_estimate=pl.CostEstimate(flops=flops,
                                      transcendentals=transcendentals,
                                      bytes_accessed=bytes_accessed),
    )(*operands)

    # rows = (b, t2), lanes = (c5, ho, wo)  ->  (T2, B, C5, Ho, Wo)
    out = out.reshape(B, T2, C5, Ho, Wo)
    return jnp.transpose(out, (1, 0, 2, 3, 4))


# ---------------------------------------------------------------------------
# Deterministic parameter construction (matches the module's layer configs:
#   grp_tempo 4->8 (2,1,1) | conv 8->8 (1,3,3)+BN | crnn: []      |
#   tempo3d 8->8 (2,3,3)   | trans 8->8 (1,2,2)/(1,2,2)+BN | post 8->1 (1,3,3)+BN)
# ---------------------------------------------------------------------------
def init_params(key):
    ks = jax.random.split(key, 8)

    def conv_w(k, cout, cin, kd, kh, kw):
        k1, k2 = jax.random.split(k)
        fan_in = cin * kd * kh * kw
        w = jax.random.normal(k1, (cout, cin, kd, kh, kw), jnp.float32) / jnp.sqrt(fan_in)
        b = 0.1 * jax.random.normal(k2, (cout,), jnp.float32)
        return w, b

    def trans_w(k, cin, cout, kd, kh, kw):
        k1, k2 = jax.random.split(k)
        fan_in = cin * kd * kh * kw
        w = jax.random.normal(k1, (cin, cout, kd, kh, kw), jnp.float32) / jnp.sqrt(fan_in)
        b = 0.1 * jax.random.normal(k2, (cout,), jnp.float32)
        return w, b

    def bn(k, c):
        k1, k2, k3, k4 = jax.random.split(k, 4)
        gamma = 1.0 + 0.1 * jax.random.normal(k1, (c,), jnp.float32)
        beta = 0.1 * jax.random.normal(k2, (c,), jnp.float32)
        mean = 0.05 * jax.random.normal(k3, (c,), jnp.float32)
        var = 0.9 + 0.2 * jax.random.uniform(k4, (c,), jnp.float32)
        return gamma, beta, mean, var

    w1, b1 = conv_w(ks[0], 8, 4, 2, 1, 1)
    w2, b2 = conv_w(ks[1], 8, 8, 1, 3, 3)
    w3, b3 = conv_w(ks[3], 8, 8, 2, 3, 3)
    wt, bt = trans_w(ks[4], 8, 8, 1, 2, 2)
    wp, bp = conv_w(ks[6], 1, 8, 1, 3, 3)
    return {
        "grp_tempo_w": w1, "grp_tempo_b": b1,
        "conv_w": w2, "conv_b": b2, "conv_bn": bn(ks[2], 8),
        "tempo3d_w": w3, "tempo3d_b": b3,
        "trans_w": wt, "trans_b": bt, "trans_bn": bn(ks[5], 8),
        "post_w": wp, "post_b": bp, "post_bn": bn(ks[7], 1),
    }


# ---------------------------------------------------------------------------
if __name__ == "__main__":
    T, B, C, H, W = 8, 2, 4, 16, 16
    root = jax.random.PRNGKey(0)
    kx, kp = jax.random.split(root)
    X = jax.random.normal(kx, (T, B, C, H, W), jnp.float32)
    params = init_params(kp)

    # Fold BN / conv / pool / pixel-shuffle weights ONCE (outside the hot path).
    folded = fold_retina_params(params, T=T, B=B, H=H, W=W)
    folded = jax.tree_util.tree_map(jax.block_until_ready, folded)

    fwd = jax.jit(retina_decoder_forward)
    out = jax.block_until_ready(fwd(X, folded))

    expected_shape = (T // 2, B, 1, H // 2, W // 2)   # (4, 2, 1, 8, 8)
    assert out.shape == expected_shape, out.shape
    assert bool(jnp.all(jnp.isfinite(out)))
    print("KERNEL_OK")
</pallas_src>

<mosaic_0001>
module attributes {stable_mosaic.version = 11 : i64} {
  func.func @_retina_fused_kernel(%arg0: memref<16x512xbf16, #tpu.memory_space<vmem>>, %arg1: memref<16x16xf32, #tpu.memory_space<vmem>>, %arg2: memref<512x512xbf16, #tpu.memory_space<vmem>>, %arg3: memref<1x512xf32, #tpu.memory_space<vmem>>, %arg4: memref<512x512xbf16, #tpu.memory_space<vmem>>, %arg5: memref<1x512xf32, #tpu.memory_space<vmem>>, %arg6: memref<512x128xbf16, #tpu.memory_space<vmem>>, %arg7: memref<2x128x128xbf16, #tpu.memory_space<vmem>>, %arg8: memref<1x128xf32, #tpu.memory_space<vmem>>, %arg9: memref<128x512xbf16, #tpu.memory_space<vmem>>, %arg10: memref<1x512xf32, #tpu.memory_space<vmem>>, %arg11: memref<512x64xbf16, #tpu.memory_space<vmem>>, %arg12: memref<1x64xf32, #tpu.memory_space<vmem>>, %arg13: memref<8x64xf32, #tpu.memory_space<vmem>>) attributes {dimension_semantics = [], scalar_prefetch = 0 : i64, scratch_operands = 0 : i64, tpu.core_type = #tpu.core_type<tc>} {
    %c0 = arith.constant 0 : index
    %c0_0 = arith.constant 0 : index
    %0 = vector.load %arg0[%c0, %c0_0] : memref<16x512xbf16, #tpu.memory_space<vmem>>, vector<16x512xbf16>
    %c0_1 = arith.constant 0 : index
    %c0_2 = arith.constant 0 : index
    %1 = vector.load %arg2[%c0_1, %c0_2] : memref<512x512xbf16, #tpu.memory_space<vmem>>, vector<512x512xbf16>
    %cst = arith.constant dense<0.000000e+00> : vector<16x512xf32>
    %2 = tpu.matmul %0, %1, %cst {dimension_numbers = #tpu.dot_dimension_numbers<[1], [0], [0], [1], [0, 0, 1, 1], [], []>} : vector<16x512xbf16>, vector<512x512xbf16>, vector<16x512xf32> -> vector<16x512xf32>
    %c0_3 = arith.constant 0 : index
    %c0_4 = arith.constant 0 : index
    %3 = vector.load %arg3[%c0_3, %c0_4] : memref<1x512xf32, #tpu.memory_space<vmem>>, vector<1x512xf32>
    %4 = vector.broadcast %3 : vector<1x512xf32> to vector<16x512xf32>
    %5 = arith.addf %2, %4 : vector<16x512xf32>
    %cst_5 = arith.constant 0.000000e+00 : f32
    %6 = vector.broadcast %cst_5 : f32 to vector<16x512xf32>
    %7 = arith.maximumf %5, %6 : vector<16x512xf32>
    %8 = arith.truncf %7 : vector<16x512xf32> to vector<16x512xbf16>
    %c0_6 = arith.constant 0 : index
    %c0_7 = arith.constant 0 : index
    %9 = vector.load %arg4[%c0_6, %c0_7] : memref<512x512xbf16, #tpu.memory_space<vmem>>, vector<512x512xbf16>
    %cst_8 = arith.constant dense<0.000000e+00> : vector<16x512xf32>
    %10 = tpu.matmul %8, %9, %cst_8 {dimension_numbers = #tpu.dot_dimension_numbers<[1], [0], [0], [1], [0, 0, 1, 1], [], []>} : vector<16x512xbf16>, vector<512x512xbf16>, vector<16x512xf32> -> vector<16x512xf32>
    %c0_9 = arith.constant 0 : index
    %c0_10 = arith.constant 0 : index
    %11 = vector.load %arg5[%c0_9, %c0_10] : memref<1x512xf32, #tpu.memory_space<vmem>>, vector<1x512xf32>
    %12 = vector.broadcast %11 : vector<1x512xf32> to vector<16x512xf32>
    %13 = arith.addf %10, %12 : vector<16x512xf32>
    %14 = math.tanh %13 : vector<16x512xf32>
    %15 = arith.truncf %14 : vector<16x512xf32> to vector<16x512xbf16>
    %c0_11 = arith.constant 0 : index
    %c0_12 = arith.constant 0 : index
    %16 = vector.load %arg6[%c0_11, %c0_12] : memref<512x128xbf16, #tpu.memory_space<vmem>>, vector<512x128xbf16>
    %cst_13 = arith.constant dense<0.000000e+00> : vector<16x128xf32>
    %17 = tpu.matmul %15, %16, %cst_13 {dimension_numbers = #tpu.dot_dimension_numbers<[1], [0], [0], [1], [0, 0, 1, 1], [], []>} : vector<16x512xbf16>, vector<512x128xbf16>, vector<16x128xf32> -> vector<16x128xf32>
    %c0_14 = arith.constant 0 : index
    %c0_15 = arith.constant 0 : index
    %18 = vector.load %arg1[%c0_14, %c0_15] : memref<16x16xf32, #tpu.memory_space<vmem>>, vector<16x16xf32>
    %cst_16 = arith.constant dense<0.000000e+00> : vector<16x128xf32>
    %19 = tpu.matmul %18, %17, %cst_16 {dimension_numbers = #tpu.dot_dimension_numbers<[1], [0], [0], [1], [0, 0, 1, 1], [], []>} : vector<16x16xf32>, vector<16x128xf32>, vector<16x128xf32> -> vector<16x128xf32>
    %20 = vector.extract_strided_slice %19 {offsets = [0, 0], sizes = [8, 128], strides = [1, 1]} : vector<16x128xf32> to vector<8x128xf32>
    %21 = arith.truncf %20 : vector<8x128xf32> to vector<8x128xbf16>
    %22 = vector.extract_strided_slice %19 {offsets = [8, 0], sizes = [8, 128], strides = [1, 1]} : vector<16x128xf32> to vector<8x128xf32>
    %23 = arith.truncf %22 : vector<8x128xf32> to vector<8x128xbf16>
    %c0_17 = arith.constant 0 : index
    %c0_18 = arith.constant 0 : index
    %c0_19 = arith.constant 0 : index
    %24 = vector.load %arg7[%c0_17, %c0_18, %c0_19] : memref<2x128x128xbf16, #tpu.memory_space<vmem>>, vector<1x128x128xbf16>
    %25 = vector.shape_cast %24 : vector<1x128x128xbf16> to vector<128x128xbf16>
    %cst_20 = arith.constant dense<0.000000e+00> : vector<8x128xf32>
    %26 = tpu.matmul %21, %25, %cst_20 {dimension_numbers = #tpu.dot_dimension_numbers<[1], [0], [0], [1], [0, 0, 1, 1], [], []>} : vector<8x128xbf16>, vector<128x128xbf16>, vector<8x128xf32> -> vector<8x128xf32>
    %c1 = arith.constant 1 : index
    %c0_21 = arith.constant 0 : index
    %c0_22 = arith.constant 0 : index
    %27 = vector.load %arg7[%c1, %c0_21, %c0_22] : memref<2x128x128xbf16, #tpu.memory_space<vmem>>, vector<1x128x128xbf16>
    %28 = vector.shape_cast %27 : vector<1x128x128xbf16> to vector<128x128xbf16>
    %cst_23 = arith.constant dense<0.000000e+00> : vector<8x128xf32>
    %29 = tpu.matmul %23, %28, %cst_23 {dimension_numbers = #tpu.dot_dimension_numbers<[1], [0], [0], [1], [0, 0, 1, 1], [], []>} : vector<8x128xbf16>, vector<128x128xbf16>, vector<8x128xf32> -> vector<8x128xf32>
    %30 = arith.addf %26, %29 : vector<8x128xf32>
    %c0_24 = arith.constant 0 : index
    %c0_25 = arith.constant 0 : index
    %31 = vector.load %arg8[%c0_24, %c0_25] : memref<1x128xf32, #tpu.memory_space<vmem>>, vector<1x128xf32>
    %32 = vector.broadcast %31 : vector<1x128xf32> to vector<8x128xf32>
    %33 = arith.addf %30, %32 : vector<8x128xf32>
    %cst_26 = arith.constant 0.000000e+00 : f32
    %34 = vector.broadcast %cst_26 : f32 to vector<8x128xf32>
    %35 = arith.maximumf %33, %34 : vector<8x128xf32>
    %36 = arith.truncf %35 : vector<8x128xf32> to vector<8x128xbf16>
    %c0_27 = arith.constant 0 : index
    %c0_28 = arith.constant 0 : index
    %37 = vector.load %arg9[%c0_27, %c0_28] : memref<128x512xbf16, #tpu.memory_space<vmem>>, vector<128x512xbf16>
    %cst_29 = arith.constant dense<0.000000e+00> : vector<8x512xf32>
    %38 = tpu.matmul %36, %37, %cst_29 {dimension_numbers = #tpu.dot_dimension_numbers<[1], [0], [0], [1], [0, 0, 1, 1], [], []>} : vector<8x128xbf16>, vector<128x512xbf16>, vector<8x512xf32> -> vector<8x512xf32>
    %c0_30 = arith.constant 0 : index
    %c0_31 = arith.constant 0 : index
    %39 = vector.load %arg10[%c0_30, %c0_31] : memref<1x512xf32, #tpu.memory_space<vmem>>, vector<1x512xf32>
    %40 = vector.broadcast %39 : vector<1x512xf32> to vector<8x512xf32>
    %41 = arith.addf %38, %40 : vector<8x512xf32>
    %42 = math.tanh %41 : vector<8x512xf32>
    %43 = arith.truncf %42 : vector<8x512xf32> to vector<8x512xbf16>
    %c0_32 = arith.constant 0 : index
    %c0_33 = arith.constant 0 : index
    %44 = vector.load %arg11[%c0_32, %c0_33] : memref<512x64xbf16, #tpu.memory_space<vmem>>, vector<512x64xbf16>
    %cst_34 = arith.constant dense<0.000000e+00> : vector<8x64xf32>
    %45 = tpu.matmul %43, %44, %cst_34 {dimension_numbers = #tpu.dot_dimension_numbers<[1], [0], [0], [1], [0, 0, 1, 1], [], []>} : vector<8x512xbf16>, vector<512x64xbf16>, vector<8x64xf32> -> vector<8x64xf32>
    %c0_35 = arith.constant 0 : index
    %c0_36 = arith.constant 0 : index
    %46 = vector.load %arg12[%c0_35, %c0_36] : memref<1x64xf32, #tpu.memory_space<vmem>>, vector<1x64xf32>
    %47 = vector.broadcast %46 : vector<1x64xf32> to vector<8x64xf32>
    %48 = arith.addf %45, %47 : vector<8x64xf32>
    %49 = math.tanh %48 : vector<8x64xf32>
    %c0_37 = arith.constant 0 : index
    %c0_38 = arith.constant 0 : index
    %50 = vector.load %arg13[%c0_37, %c0_38] : memref<8x64xf32, #tpu.memory_space<vmem>>, vector<8x64xf32>
    tpu.vector_store %arg13[%c0_37, %c0_38], %49 {strides = array<i32>} : memref<8x64xf32, #tpu.memory_space<vmem>>, vector<8x64xf32>,
    return
  }
}

</mosaic_0001>

<bundles_post_ra>
// kernel: retina_decoder_forward.1
= control target key start
LH: loop header
LB: loop body
LE: loop exit
PB: predicated region body
PF: predicated region fallthrough
CT: control target
= control target key end

     0   :  { %vm2410_vm0 = vcmask 130048   ;;  %vm3179_vm1 = vcmask 523264   ;;  %s7237_s2 = inlined_call_operand.vmem [shape: bf16[512,512], index: 2, kind: input, shape index: {}]   ;;  %s7238_s0 = inlined_call_operand.vmem [shape: bf16[16,512], index: 0, kind: input, shape index: {}]   ;;  %s7239_s4 = inlined_call_operand.vmem [shape: bf16[512,512], index: 4, kind: input, shape index: {}]   ;;  %s7240_s3 = inlined_call_operand.vmem [shape: f32[1,512], index: 3, kind: input, shape index: {}]   ;;  %s7241_s6 = inlined_call_operand.vmem [shape: bf16[512,128], index: 6, kind: input, shape index: {}]   ;;  %s7242_s5 = inlined_call_operand.vmem [shape: f32[1,512], index: 5, kind: input, shape index: {}]   ;;  %s7243_s7 = inlined_call_operand.vmem [shape: bf16[2,128,128], index: 7, kind: input, shape index: {}]   ;;  %s7244_s1 = inlined_call_operand.vmem [shape: f32[16,16], index: 1, kind: input, shape index: {}]   ;;  %s7245_s9 = inlined_call_operand.vmem [shape: bf16[128,512], index: 9, kind: input, shape index: {}]   ;;  %s7246_s8 = inlined_call_operand.vmem [shape: f32[1,128], index: 8, kind: input, shape index: {}]   ;;  %s7247_s11 = inlined_call_operand.vmem [shape: bf16[512,64], index: 11, kind: input, shape index: {}]   ;;  %s7248_s10 = inlined_call_operand.vmem [shape: f32[1,512], index: 10, kind: input, shape index: {}]   ;;  %s7249_s12 = inlined_call_operand.vmem [shape: f32[1,64], index: 12, kind: input, shape index: {}]   ;;  %s7250_s13 = inlined_call_operand.vmem [shape: f32[8,64], index: 13, kind: output, shape index: {}]  }
   0x1   :  { %v3315_v0 = vld [vmem:[%s7237_s2 + $0xe0] sm:$0xf]  ;;  %v4725_v1 = vld [vmem:[%s7237_s2 + $0xec] sm:$0xf0] }
   0x2   :  { %v3443_v2 = vld [vmem:[%s7237_s2 + $0x1e0] sm:$0xf]  ;;  %v3316_v3 = vor.u32 %v4725_v1, %v3315_v0  ;;  %v4757_v4 = vld [vmem:[%s7237_s2 + $0x1ec] sm:$0xf0] }
   0x3   :  { %v3571_v5 = vld [vmem:[%s7237_s2 + $0x2e0] sm:$0xf]  ;;  %v4789_v6 = vld [vmem:[%s7237_s2 + $0x2ec] sm:$0xf0]  ;;  %v3444_v7 = vor.u32 %v4757_v4, %v3443_v2 }
   0x4   :  { %v3572_v8 = vor.u32 %v4789_v6, %v3571_v5  ;;  %v3699_v9 = vld [vmem:[%s7237_s2 + $0x3e0] sm:$0xf]  ;;  %v4821_v10 = vld [vmem:[%s7237_s2 + $0x3ec] sm:$0xf0]  ;;  %846 = vmatpush.bf16.msra.mxu0 %v3316_v3 }
   0x5   :  { %v3299_v11 = vld [vmem:[%s7237_s2 + $0xc0] sm:$0xf]  ;;  %v3700_v12 = vor.u32 %v4821_v10, %v3699_v9  ;;  %v4721_v13 = vld [vmem:[%s7237_s2 + $0xcc] sm:$0xf0]  ;;  %860 = vmatpush.bf16.msra.mxu1 %v3444_v7 }
   0x6   :  { %v3427_v14 = vld [vmem:[%s7237_s2 + $0x1c0] sm:$0xf]  ;;  %v4753_v15 = vld [vmem:[%s7237_s2 + $0x1cc] sm:$0xf0]  ;;  %874 = vmatpush.bf16.msra.mxu2 %v3572_v8  ;;  %v3300_v16 = vor.u32 %v4721_v13, %v3299_v11 }
   0x7   :  { %v3428_v17 = vor.u32 %v4753_v15, %v3427_v14  ;;  %v3555_v18 = vld [vmem:[%s7237_s2 + $0x2c0] sm:$0xf]  ;;  %v4785_v19 = vld [vmem:[%s7237_s2 + $0x2cc] sm:$0xf0]  ;;  %888 = vmatpush.bf16.msra.mxu3 %v3700_v12 }
   0x8   :  { %v3683_v20 = vld [vmem:[%s7237_s2 + $0x3c0] sm:$0xf]  ;;  %v3556_v21 = vor.u32 %v4785_v19, %v3555_v18  ;;  %v4817_v22 = vld [vmem:[%s7237_s2 + $0x3cc] sm:$0xf0]  ;;  %847 = vmatpush.bf16.msra.mxu0 %v3300_v16 }
   0x9   :  { %v3283_v23 = vld [vmem:[%s7237_s2 + $0xa0] sm:$0xf]  ;;  %v4717_v24 = vld [vmem:[%s7237_s2 + $0xac] sm:$0xf0]  ;;  %v3684_v25 = vor.u32 %v4817_v22, %v3683_v20  ;;  %861 = vmatpush.bf16.msra.mxu1 %v3428_v17 }
   0xa   :  { %v3411_v26 = vld [vmem:[%s7237_s2 + $0x1a0] sm:$0xf]  ;;  %v4749_v27 = vld [vmem:[%s7237_s2 + $0x1ac] sm:$0xf0]  ;;  %v3284_v29 = vor.u32 %v4717_v24, %v3283_v23  ;;  %875 = vmatpush.bf16.msra.mxu2 %v3556_v21 }
   0xb   :  { %v3539_v28 = vld [vmem:[%s7237_s2 + $0x2a0] sm:$0xf]  ;;  %v4781_v30 = vld [vmem:[%s7237_s2 + $0x2ac] sm:$0xf0]  ;;  %v3412_v33 = vor.u32 %v4749_v27, %v3411_v26  ;;  %889 = vmatpush.bf16.msra.mxu3 %v3684_v25  ;;  %v4723_v27 = vld [vmem:[%s7237_s2 + $0xe4] sm:$0xf] }
   0xc   :  { %v3667_v31 = vld [vmem:[%s7237_s2 + $0x3a0] sm:$0xf]  ;;  %v4813_v32 = vld [vmem:[%s7237_s2 + $0x3ac] sm:$0xf0]  ;;  %v3540_v34 = vor.u32 %v4781_v30, %v3539_v28  ;;  %848 = vmatpush.bf16.msra.mxu0 %v3284_v29  ;;  %v3317_v29 = vld [vmem:[%s7237_s2 + $0xf0] sm:$0xf0] }
   0xd   :  { %v3267_v35 = vld [vmem:[%s7237_s2 + $0x80] sm:$0xf]  ;;  %v4713_v36 = vld [vmem:[%s7237_s2 + $0x8c] sm:$0xf0]  ;;  %v3668_v38 = vor.u32 %v4813_v32, %v3667_v31  ;;  %862 = vmatpush.bf16.msra.mxu1 %v3412_v33  ;;  %v4755_v30 = vld [vmem:[%s7237_s2 + $0x1e4] sm:$0xf] }
   0xe   :  { %v3395_v37 = vld [vmem:[%s7237_s2 + $0x180] sm:$0xf]  ;;  %v4745_v39 = vld [vmem:[%s7237_s2 + $0x18c] sm:$0xf0]  ;;  %v3268_v44 = vor.u32 %v4713_v36, %v3267_v35  ;;  %876 = vmatpush.bf16.msra.mxu2 %v3540_v34  ;;  %v3445_v31 = vld [vmem:[%s7237_s2 + $0x1f0] sm:$0xf0] }
   0xf   :  { %v3523_v40 = vld [vmem:[%s7237_s2 + $0x280] sm:$0xf]  ;;  %v4777_v41 = vld [vmem:[%s7237_s2 + $0x28c] sm:$0xf0]  ;;  %v3396_v45 = vor.u32 %v4745_v39, %v3395_v37  ;;  %890 = vmatpush.bf16.msra.mxu3 %v3668_v38  ;;  %v4787_v32 = vld [vmem:[%s7237_s2 + $0x2e4] sm:$0xf] }
  0x10   :  { %v3651_v42 = vld [vmem:[%s7237_s2 + $0x380] sm:$0xf]  ;;  %v4809_v43 = vld [vmem:[%s7237_s2 + $0x38c] sm:$0xf0]  ;;  %v3524_v46 = vor.u32 %v4777_v41, %v3523_v40  ;;  %849 = vmatpush.bf16.msra.mxu0 %v3268_v44  ;;  %v3573_v33 = vld [vmem:[%s7237_s2 + $0x2f0] sm:$0xf0] }
  0x11   :  { %v3251_v47 = vld [vmem:[%s7237_s2 + $0x60] sm:$0xf]  ;;  %v4709_v48 = vld [vmem:[%s7237_s2 + $0x6c] sm:$0xf0]  ;;  %v3652_v50 = vor.u32 %v4809_v43, %v3651_v42  ;;  %863 = vmatpush.bf16.msra.mxu1 %v3396_v45  ;;  %v4819_v34 = vld [vmem:[%s7237_s2 + $0x3e4] sm:$0xf]  ;;  %v3320_v45 = vor.u32 %v4723_v27, %v3317_v29 }
  0x12   :  { %v3379_v49 = vld [vmem:[%s7237_s2 + $0x160] sm:$0xf]  ;;  %v4741_v51 = vld [vmem:[%s7237_s2 + $0x16c] sm:$0xf0]  ;;  %v3252_v56 = vor.u32 %v4709_v48, %v3251_v47  ;;  %877 = vmatpush.bf16.msra.mxu2 %v3524_v46  ;;  %v3701_v36 = vld [vmem:[%s7237_s2 + $0x3f0] sm:$0xf0] }
  0x13   :  { %v3507_v52 = vld [vmem:[%s7237_s2 + $0x260] sm:$0xf]  ;;  %v4773_v53 = vld [vmem:[%s7237_s2 + $0x26c] sm:$0xf0]  ;;  %v3380_v57 = vor.u32 %v4741_v51, %v3379_v49  ;;  %891 = vmatpush.bf16.msra.mxu3 %v3652_v50  ;;  %v3195_v37 = vld [vmem:[%s7238_s0 + $0x8] sm:$0xf]  ;;  %v3448_v49 = vor.u32 %v4755_v30, %v3445_v31  ;;  %v3576_v50 = vor.u32 %v4787_v32, %v3573_v33 }
  0x14   :  { %v3635_v54 = vld [vmem:[%s7237_s2 + $0x360] sm:$0xf]  ;;  %v4805_v55 = vld [vmem:[%s7237_s2 + $0x36c] sm:$0xf0]  ;;  %v3508_v58 = vor.u32 %v4773_v53, %v3507_v52  ;;  %850 = vmatpush.bf16.msra.mxu0 %v3252_v56  ;;  %v4694_v38 = vld [vmem:[%s7238_s0 + $0x14] sm:$0xf0] }
  0x15   :  { %v3235_v59 = vld [vmem:[%s7237_s2 + $0x40] sm:$0xf]  ;;  %v4705_v60 = vld [vmem:[%s7237_s2 + $0x4c] sm:$0xf0]  ;;  %v3636_v62 = vor.u32 %v4805_v55, %v3635_v54  ;;  %864 = vmatpush.bf16.msra.mxu1 %v3380_v57  ;;  %v4692_v43 = vld [vmem:[%s7238_s0 + $0xc] sm:$0xf]  ;;  %v3704_v54 = vor.u32 %v4819_v34, %v3701_v36  ;;  %v5410_v55 = vor.u32 %v4694_v38, %v3195_v37 }
  0x16   :  { %v3363_v61 = vld [vmem:[%s7237_s2 + $0x140] sm:$0xf]  ;;  %v4737_v63 = vld [vmem:[%s7237_s2 + $0x14c] sm:$0xf0]  ;;  %v3236_v4 = vor.u32 %v4705_v60, %v3235_v59  ;;  %878 = vmatpush.bf16.msra.mxu2 %v3508_v58  ;;  %v3197_v46 = vld [vmem:[%s7238_s0 + $0x18] sm:$0xf0] }
  0x17   :  { %v3491_v0 = vld [vmem:[%s7237_s2 + $0x240] sm:$0xf]  ;;  %v4769_v1 = vld [vmem:[%s7237_s2 + $0x24c] sm:$0xf0]  ;;  %v3364_v6 = vor.u32 %v4737_v63, %v3363_v61  ;;  %892 = vmatpush.bf16.msra.mxu3 %v3636_v62  ;;  %v4719_v47 = vld [vmem:[%s7237_s2 + $0xc4] sm:$0xf]  ;;  %v5423_v60 = vor.u32 %v4692_v43, %v3197_v46 }
  0x18   :  { %v3619_v2 = vld [vmem:[%s7237_s2 + $0x340] sm:$0xf]  ;;  %v4801_v3 = vld [vmem:[%s7237_s2 + $0x34c] sm:$0xf0]  ;;  %v3492_v7 = vor.u32 %v4769_v1, %v3491_v0  ;;  %851 = vmatpush.bf16.msra.mxu0 %v3236_v4  ;;  %v3301_v48 = vld [vmem:[%s7237_s2 + $0xd0] sm:$0xf0] }
  0x19   :  { %v3219_v5 = vld [vmem:[%s7237_s2 + $0x20] sm:$0xf]  ;;  %v4701_v8 = vld [vmem:[%s7237_s2 + $0x2c] sm:$0xf0]  ;;  %v3620_v11 = vor.u32 %v4801_v3, %v3619_v2  ;;  %865 = vmatpush.bf16.msra.mxu1 %v3364_v6  ;;  %v4751_v51 = vld [vmem:[%s7237_s2 + $0x1c4] sm:$0xf]  ;;  %v3304_v63 = vor.u32 %v4719_v47, %v3301_v48 }
  0x1a   :  { %v3347_v9 = vld [vmem:[%s7237_s2 + $0x120] sm:$0xf]  ;;  %v4733_v10 = vld [vmem:[%s7237_s2 + $0x12c] sm:$0xf0]  ;;  %v3220_v18 = vor.u32 %v4701_v8, %v3219_v5  ;;  %879 = vmatpush.bf16.msra.mxu2 %v3492_v7  ;;  %v4691_v52 = vld [vmem:[%s7238_s0 + $0x4] sm:$0xf] }
  0x1b   :  { %v3475_v12 = vld [vmem:[%s7237_s2 + $0x220] sm:$0xf]  ;;  %v4765_v13 = vld [vmem:[%s7237_s2 + $0x22c] sm:$0xf0]  ;;  %v3348_v23 = vor.u32 %v4733_v10, %v3347_v9  ;;  %893 = vmatpush.bf16.msra.mxu3 %v3620_v11  ;;  %v3189_v53 = vld [vmem:[%s7238_s0 + $0x10] sm:$0xf0] }
  0x1c   :  { %v3603_v14 = vld [vmem:[%s7237_s2 + $0x320] sm:$0xf]  ;;  %v4797_v15 = vld [vmem:[%s7237_s2 + $0x32c] sm:$0xf0]  ;;  %v3476_v24 = vor.u32 %v4765_v13, %v3475_v12  ;;  %852 = vmatpush.bf16.msra.mxu0 %v3220_v18  ;;  %v3429_v56 = vld [vmem:[%s7237_s2 + $0x1d0] sm:$0xf0]  ;;  %v5431_v0 = vor.u32 %v4691_v52, %v3189_v53 }
  0x1d   :  { %v3203_v16 = vld [vmem:[%s7237_s2] sm:$0xf]  ;;  %v4697_v17 = vld [vmem:[%s7237_s2 + $0xc] sm:$0xf0]  ;;  %v3604_v28 = vor.u32 %v4797_v15, %v3603_v14  ;;  %866 = vmatpush.bf16.msra.mxu1 %v3348_v23  ;;  %v4783_v57 = vld [vmem:[%s7237_s2 + $0x2c4] sm:$0xf]  ;;  %v3432_v1 = vor.u32 %v4751_v51, %v3429_v56 }
  0x1e   :  { %v3331_v19 = vld [vmem:[%s7237_s2 + $0x100] sm:$0xf]  ;;  %v4729_v20 = vld [vmem:[%s7237_s2 + $0x10c] sm:$0xf0]  ;;  %v3204_v35 = vor.u32 %v4697_v17, %v3203_v16  ;;  %880 = vmatpush.bf16.msra.mxu2 %v3476_v24  ;;  %v3557_v58 = vld [vmem:[%s7237_s2 + $0x2d0] sm:$0xf0] }
  0x1f   :  { %v3459_v21 = vld [vmem:[%s7237_s2 + $0x200] sm:$0xf]  ;;  %v4761_v22 = vld [vmem:[%s7237_s2 + $0x20c] sm:$0xf0]  ;;  %v3332_v39 = vor.u32 %v4729_v20, %v3331_v19  ;;  %894 = vmatpush.bf16.msra.mxu3 %v3604_v28  ;;  %v4815_v61 = vld [vmem:[%s7237_s2 + $0x3c4] sm:$0xf]  ;;  %v3560_v2 = vor.u32 %v4783_v57, %v3557_v58 }
  0x20   :  { %v3587_v25 = vld [vmem:[%s7237_s2 + $0x300] sm:$0xf]  ;;  %v4793_v26 = vld [vmem:[%s7237_s2 + $0x30c] sm:$0xf0]  ;;  %v3460_v40 = vor.u32 %v4761_v22, %v3459_v21  ;;  %853 = vmatpush.bf16.msra.mxu0 %v3204_v35  ;;  %v3685_v62 = vld [vmem:[%s7237_s2 + $0x3d0] sm:$0xf0] }
  0x21   :  { %v3187_v41 = vld [vmem:[%s7238_s0] sm:$0xf]  ;;  %v4693_v42 = vld [vmem:[%s7238_s0 + $0xc] sm:$0xf0]  ;;  %v3588_v44 = vor.u32 %v4793_v26, %v3587_v25  ;;  %867 = vmatpush.bf16.msra.mxu1 %v3332_v39  ;;  %v4715_v3 = vld [vmem:[%s7237_s2 + $0xa4] sm:$0xf]  ;;  %v3688_v6 = vor.u32 %v4815_v61, %v3685_v62 }
  0x22   :  { %881 = vmatpush.bf16.msra.mxu2 %v3460_v40  ;;  %v5421_v59 = vor.u32 %v4693_v42, %v3187_v41  ;;  %v3285_v4 = vld [vmem:[%s7237_s2 + $0xb0] sm:$0xf0]  ;;  %v4747_v5 = vld [vmem:[%s7237_s2 + $0x1a4] sm:$0xf] }
  0x23   :  { %895 = vmatpush.bf16.msra.mxu3 %v3588_v44  ;;  %v3413_v7 = vld [vmem:[%s7237_s2 + $0x1b0] sm:$0xf0]  ;;  %v4779_v8 = vld [vmem:[%s7237_s2 + $0x2a4] sm:$0xf]  ;;  %v3288_v12 = vor.u32 %v4715_v3, %v3285_v4 }
  0x24   :  { %902 = vmatpush.bf16.msrb.mxu0 %v3320_v45  ;;  %v3541_v9 = vld [vmem:[%s7237_s2 + $0x2b0] sm:$0xf0]  ;;  %v4811_v10 = vld [vmem:[%s7237_s2 + $0x3a4] sm:$0xf]  ;;  %868 = vmatmul.bf16.vlgmr.msra.gmra.mxu1 %v5431_v0  ;;  %v3416_v13 = vor.u32 %v4747_v5, %v3413_v7 }
  0x25   :  { %916 = vmatpush.bf16.msrb.mxu1 %v3448_v49  ;;  %882 = vmatmul.bf16.vlgmr.msra.gmra.mxu2 %v5410_v55  ;;  %v3669_v11 = vld [vmem:[%s7237_s2 + $0x3b0] sm:$0xf0]  ;;  %v3544_v14 = vor.u32 %v4779_v8, %v3541_v9  ;;  %v4711_v15 = vld [vmem:[%s7237_s2 + $0x84] sm:$0xf] }
  0x26   :  { %930 = vmatpush.bf16.msrb.mxu2 %v3576_v50  ;;  %854 = vmatmul.bf16.vlgmr.msra.gmra.mxu0 %v5421_v59  ;;  %v3269_v16 = vld [vmem:[%s7237_s2 + $0x90] sm:$0xf0]  ;;  %v4743_v17 = vld [vmem:[%s7237_s2 + $0x184] sm:$0xf]  ;;  %v3672_v18 = vor.u32 %v4811_v10, %v3669_v11 }
  0x27   :  { %944 = vmatpush.bf16.msrb.mxu3 %v3704_v54  ;;  %v3397_v19 = vld [vmem:[%s7237_s2 + $0x190] sm:$0xf0]  ;;  %v4775_v20 = vld [vmem:[%s7237_s2 + $0x284] sm:$0xf]  ;;  %v3272_v24 = vor.u32 %v4711_v15, %v3269_v16  ;;  %v4758_v16 = vld [vmem:[%s7237_s2 + $0x1f4] sm:$0xf0] }
  0x28   :  { %896 = vmatmul.bf16.vlgmr.msra.gmra.mxu3 %v5423_v60  ;;  %903 = vmatpush.bf16.msrb.mxu0 %v3304_v63  ;;  %v3525_v21 = vld [vmem:[%s7237_s2 + $0x290] sm:$0xf0]  ;;  %v4807_v22 = vld [vmem:[%s7237_s2 + $0x384] sm:$0xf]  ;;  %v3400_v25 = vor.u32 %v4743_v17, %v3397_v19  ;;  %v3579_v17 = vld [vmem:[%s7237_s2 + $0x2e8] sm:$0xf] }
  0x29   :  { %917 = vmatpush.bf16.msrb.mxu1 %v3432_v1  ;;  %v3653_v23 = vld [vmem:[%s7237_s2 + $0x390] sm:$0xf0]  ;;  %v3528_v26 = vor.u32 %v4775_v20, %v3525_v21  ;;  %v4707_v27 = vld [vmem:[%s7237_s2 + $0x64] sm:$0xf]  ;;  %v3707_v21 = vld [vmem:[%s7237_s2 + $0x3e8] sm:$0xf] }
  0x2a   :  { %931 = vmatpush.bf16.msrb.mxu2 %v3560_v2  ;;  %v3253_v28 = vld [vmem:[%s7237_s2 + $0x70] sm:$0xf0]  ;;  %v4739_v29 = vld [vmem:[%s7237_s2 + $0x164] sm:$0xf]  ;;  %v3656_v30 = vor.u32 %v4807_v22, %v3653_v23  ;;  %v4822_v22 = vld [vmem:[%s7237_s2 + $0x3f4] sm:$0xf0] }
  0x2b   :  { %945 = vmatpush.bf16.msrb.mxu3 %v3688_v6  ;;  %v3381_v31 = vld [vmem:[%s7237_s2 + $0x170] sm:$0xf0]  ;;  %v4771_v32 = vld [vmem:[%s7237_s2 + $0x264] sm:$0xf]  ;;  %v3256_v36 = vor.u32 %v4707_v27, %v3253_v28  ;;  %v3307_v27 = vld [vmem:[%s7237_s2 + $0xc8] sm:$0xf] }
  0x2c   :  { %904 = vmatpush.bf16.msrb.mxu0 %v3288_v12  ;;  %v3509_v33 = vld [vmem:[%s7237_s2 + $0x270] sm:$0xf0]  ;;  %v4803_v34 = vld [vmem:[%s7237_s2 + $0x364] sm:$0xf]  ;;  %v3384_v37 = vor.u32 %v4739_v29, %v3381_v31  ;;  %v3323_v12 = vld [vmem:[%s7237_s2 + $0xe8] sm:$0xf] }
  0x2d   :  { %918 = vmatpush.bf16.msrb.mxu1 %v3416_v13  ;;  %v3637_v35 = vld [vmem:[%s7237_s2 + $0x370] sm:$0xf0]  ;;  %v3512_v38 = vor.u32 %v4771_v32, %v3509_v33  ;;  %v4703_v39 = vld [vmem:[%s7237_s2 + $0x44] sm:$0xf]  ;;  %v4726_v13 = vld [vmem:[%s7237_s2 + $0xf4] sm:$0xf0] }
  0x2e   :  { %932 = vmatpush.bf16.msrb.mxu2 %v3544_v14  ;;  %v3237_v40 = vld [vmem:[%s7237_s2 + $0x50] sm:$0xf0]  ;;  %v4735_v41 = vld [vmem:[%s7237_s2 + $0x144] sm:$0xf]  ;;  %v3640_v42 = vor.u32 %v4803_v34, %v3637_v35  ;;  %v3451_v14 = vld [vmem:[%s7237_s2 + $0x1e8] sm:$0xf] }
  0x2f   :  { %946 = vmatpush.bf16.msrb.mxu3 %v3672_v18  ;;  %v3365_v43 = vld [vmem:[%s7237_s2 + $0x150] sm:$0xf0]  ;;  %v4767_v44 = vld [vmem:[%s7237_s2 + $0x244] sm:$0xf]  ;;  %v3240_v48 = vor.u32 %v4703_v39, %v3237_v40  ;;  %v4790_v18 = vld [vmem:[%s7237_s2 + $0x2f4] sm:$0xf0] }
  0x30   :  { %905 = vmatpush.bf16.msrb.mxu0 %v3272_v24  ;;  %v3493_v45 = vld [vmem:[%s7237_s2 + $0x250] sm:$0xf0]  ;;  %v4799_v46 = vld [vmem:[%s7237_s2 + $0x344] sm:$0xf]  ;;  %v3368_v49 = vor.u32 %v4735_v41, %v3365_v43  ;;  %v3324_v24 = vor.u32 %v4726_v13, %v3323_v12  ;;  %v4722_v28 = vld [vmem:[%s7237_s2 + $0xd4] sm:$0xf0] }
  0x31   :  { %919 = vmatpush.bf16.msrb.mxu1 %v3400_v25  ;;  %v3621_v47 = vld [vmem:[%s7237_s2 + $0x350] sm:$0xf0]  ;;  %v3496_v50 = vor.u32 %v4767_v44, %v3493_v45  ;;  %v4699_v51 = vld [vmem:[%s7237_s2 + $0x24] sm:$0xf]  ;;  %v3452_v25 = vor.u32 %v4758_v16, %v3451_v14  ;;  %v3435_v29 = vld [vmem:[%s7237_s2 + $0x1c8] sm:$0xf] }
  0x32   :  { %933 = vmatpush.bf16.msrb.mxu2 %v3528_v26  ;;  %v3221_v52 = vld [vmem:[%s7237_s2 + $0x30] sm:$0xf0]  ;;  %v4731_v53 = vld [vmem:[%s7237_s2 + $0x124] sm:$0xf]  ;;  %v3624_v54 = vor.u32 %v4799_v46, %v3621_v47  ;;  %v3580_v26 = vor.u32 %v4790_v18, %v3579_v17  ;;  %v4754_v31 = vld [vmem:[%s7237_s2 + $0x1d4] sm:$0xf0] }
  0x33   :  { %947 = vmatpush.bf16.msrb.mxu3 %v3656_v30  ;;  %v3349_v56 = vld [vmem:[%s7237_s2 + $0x130] sm:$0xf0]  ;;  %v4763_v57 = vld [vmem:[%s7237_s2 + $0x224] sm:$0xf]  ;;  %v3224_v63 = vor.u32 %v4699_v51, %v3221_v52  ;;  %v3708_v30 = vor.u32 %v4822_v22, %v3707_v21  ;;  %v3563_v32 = vld [vmem:[%s7237_s2 + $0x2c8] sm:$0xf] }
  0x34   :  { %906 = vmatpush.bf16.msrb.mxu0 %v3256_v36  ;;  %v3477_v58 = vld [vmem:[%s7237_s2 + $0x230] sm:$0xf0]  ;;  %v4795_v61 = vld [vmem:[%s7237_s2 + $0x324] sm:$0xf]  ;;  %v3352_v3 = vor.u32 %v4731_v53, %v3349_v56  ;;  %v4786_v33 = vld [vmem:[%s7237_s2 + $0x2d4] sm:$0xf0]  ;;  %v3308_v36 = vor.u32 %v4722_v28, %v3307_v27 }
  0x35   :  { %920 = vmatpush.bf16.msrb.mxu1 %v3384_v37  ;;  %v3605_v62 = vld [vmem:[%s7237_s2 + $0x330] sm:$0xf0]  ;;  %v4695_v1 = vld [vmem:[%s7237_s2 + $0x4] sm:$0xf]  ;;  %v3480_v4 = vor.u32 %v4763_v57, %v3477_v58  ;;  %v3691_v34 = vld [vmem:[%s7237_s2 + $0x3c8] sm:$0xf]  ;;  %v3436_v37 = vor.u32 %v4754_v31, %v3435_v29 }
  0x36   :  { %934 = vmatpush.bf16.msrb.mxu2 %v3512_v38  ;;  %v3205_v2 = vld [vmem:[%s7237_s2 + $0x10] sm:$0xf0]  ;;  %v4727_v5 = vld [vmem:[%s7237_s2 + $0x104] sm:$0xf]  ;;  %v3608_v8 = vor.u32 %v4795_v61, %v3605_v62  ;;  %v4818_v35 = vld [vmem:[%s7237_s2 + $0x3d4] sm:$0xf0]  ;;  %v3564_v38 = vor.u32 %v4786_v33, %v3563_v32 }
  0x37   :  { %948 = vmatpush.bf16.msrb.mxu3 %v3640_v42  ;;  %v3333_v6 = vld [vmem:[%s7237_s2 + $0x110] sm:$0xf0]  ;;  %v4759_v7 = vld [vmem:[%s7237_s2 + $0x204] sm:$0xf]  ;;  %v3208_v15 = vor.u32 %v4695_v1, %v3205_v2  ;;  %v3291_v39 = vld [vmem:[%s7237_s2 + $0xa8] sm:$0xf]  ;;  %v3692_v42 = vor.u32 %v4818_v35, %v3691_v34 }
  0x38   :  { %907 = vmatpush.bf16.msrb.mxu0 %v3240_v48  ;;  %v3461_v9 = vld [vmem:[%s7237_s2 + $0x210] sm:$0xf0]  ;;  %v4791_v10 = vld [vmem:[%s7237_s2 + $0x304] sm:$0xf]  ;;  %v3336_v19 = vor.u32 %v4727_v5, %v3333_v6  ;;  %v4718_v40 = vld [vmem:[%s7237_s2 + $0xb4] sm:$0xf0] }
  0x39   :  { %921 = vmatpush.bf16.msrb.mxu1 %v3368_v49  ;;  %v3589_v11 = vld [vmem:[%s7237_s2 + $0x310] sm:$0xf0]  ;;  %v3464_v20 = vor.u32 %v4759_v7, %v3461_v9  ;;  %v3419_v41 = vld [vmem:[%s7237_s2 + $0x1a8] sm:$0xf]  ;;  %v4750_v43 = vld [vmem:[%s7237_s2 + $0x1b4] sm:$0xf0]  ;;  %v3292_v48 = vor.u32 %v4718_v40, %v3291_v39 }
  0x3a   :  { %935 = vmatpush.bf16.msrb.mxu2 %v3496_v50  ;;  %v3592_v23 = vor.u32 %v4791_v10, %v3589_v11  ;;  %v3547_v44 = vld [vmem:[%s7237_s2 + $0x2a8] sm:$0xf]  ;;  %v4782_v45 = vld [vmem:[%s7237_s2 + $0x2b4] sm:$0xf0]  ;;  %v3420_v49 = vor.u32 %v4750_v43, %v3419_v41 }
  0x3b   :  { %949 = vmatpush.bf16.msrb.mxu3 %v3624_v54  ;;  %v3675_v46 = vld [vmem:[%s7237_s2 + $0x3a8] sm:$0xf]  ;;  %v4814_v47 = vld [vmem:[%s7237_s2 + $0x3b4] sm:$0xf0]  ;;  %v3548_v50 = vor.u32 %v4782_v45, %v3547_v44 }
  0x3c   :  { %908 = vmatpush.bf16.msrb.mxu0 %v3224_v63  ;;  %v3275_v51 = vld [vmem:[%s7237_s2 + $0x88] sm:$0xf]  ;;  %v4714_v52 = vld [vmem:[%s7237_s2 + $0x94] sm:$0xf0]  ;;  %v3676_v54 = vor.u32 %v4814_v47, %v3675_v46 }
  0x3d   :  { %922 = vmatpush.bf16.msrb.mxu1 %v3352_v3  ;;  %v3403_v53 = vld [vmem:[%s7237_s2 + $0x188] sm:$0xf]  ;;  %v4746_v56 = vld [vmem:[%s7237_s2 + $0x194] sm:$0xf0]  ;;  %v3276_v63 = vor.u32 %v4714_v52, %v3275_v51  ;;  %v3453_v52 = vld [vmem:[%s7237_s2 + $0x1f8] sm:$0xf0] }
  0x3e   :  { %936 = vmatpush.bf16.msrb.mxu2 %v3480_v4  ;;  %v3531_v57 = vld [vmem:[%s7237_s2 + $0x288] sm:$0xf]  ;;  %v4778_v58 = vld [vmem:[%s7237_s2 + $0x294] sm:$0xf0]  ;;  %v3404_v1 = vor.u32 %v4746_v56, %v3403_v53  ;;  %v4788_v53 = vld [vmem:[%s7237_s2 + $0x2ec] sm:$0xf] }
  0x3f   :  { %950 = vmatpush.bf16.msrb.mxu3 %v3608_v8  ;;  %v3659_v61 = vld [vmem:[%s7237_s2 + $0x388] sm:$0xf]  ;;  %v4810_v62 = vld [vmem:[%s7237_s2 + $0x394] sm:$0xf0]  ;;  %v3532_v2 = vor.u32 %v4778_v58, %v3531_v57  ;;  %v4820_v58 = vld [vmem:[%s7237_s2 + $0x3ec] sm:$0xf] }
  0x40   :  { %909 = vmatpush.bf16.msrb.mxu0 %v3208_v15  ;;  %v3259_v3 = vld [vmem:[%s7237_s2 + $0x68] sm:$0xf]  ;;  %v4710_v4 = vld [vmem:[%s7237_s2 + $0x74] sm:$0xf0]  ;;  %v3660_v6 = vor.u32 %v4810_v62, %v3659_v61  ;;  %v3709_v61 = vld [vmem:[%s7237_s2 + $0x3f8] sm:$0xf0] }
  0x41   :  { %923 = vmatpush.bf16.msrb.mxu1 %v3336_v19  ;;  %v3387_v5 = vld [vmem:[%s7237_s2 + $0x168] sm:$0xf]  ;;  %v4742_v7 = vld [vmem:[%s7237_s2 + $0x174] sm:$0xf0]  ;;  %v3260_v12 = vor.u32 %v4710_v4, %v3259_v3  ;;  %v4720_v3 = vld [vmem:[%s7237_s2 + $0xcc] sm:$0xf] }
  0x42   :  { %937 = vmatpush.bf16.msrb.mxu2 %v3464_v20  ;;  %v3515_v8 = vld [vmem:[%s7237_s2 + $0x268] sm:$0xf]  ;;  %v4774_v9 = vld [vmem:[%s7237_s2 + $0x274] sm:$0xf0]  ;;  %v3388_v13 = vor.u32 %v4742_v7, %v3387_v5  ;;  %v3309_v4 = vld [vmem:[%s7237_s2 + $0xd8] sm:$0xf0] }
  0x43   :  { %951 = vmatpush.bf16.msrb.mxu3 %v3592_v23  ;;  %910 = vmatmul.bf16.vlgmr.msrb.gmra.mxu0 %v5421_v59  ;;  %v3643_v10 = vld [vmem:[%s7237_s2 + $0x368] sm:$0xf]  ;;  %v4806_v11 = vld [vmem:[%s7237_s2 + $0x374] sm:$0xf0]  ;;  %v3516_v14 = vor.u32 %v4774_v9, %v3515_v8  ;;  %v4752_v5 = vld [vmem:[%s7237_s2 + $0x1cc] sm:$0xf] }
  0x44   :  { %958 = vmatpush.bf16.msra.mxu0 %v3324_v24  ;;  %924 = vmatmul.bf16.vlgmr.msrb.gmra.mxu1 %v5431_v0  ;;  %v3243_v15 = vld [vmem:[%s7237_s2 + $0x48] sm:$0xf]  ;;  %v4706_v16 = vld [vmem:[%s7237_s2 + $0x54] sm:$0xf0]  ;;  %v3644_v18 = vor.u32 %v4806_v11, %v3643_v10  ;;  %v3437_v7 = vld [vmem:[%s7237_s2 + $0x1d8] sm:$0xf0] }
  0x45   :  { %972 = vmatpush.bf16.msra.mxu1 %v3452_v25  ;;  %938 = vmatmul.bf16.vlgmr.msrb.gmra.mxu2 %v5410_v55  ;;  %v3371_v17 = vld [vmem:[%s7237_s2 + $0x148] sm:$0xf]  ;;  %v4738_v19 = vld [vmem:[%s7237_s2 + $0x154] sm:$0xf0]  ;;  %v3244_v24 = vor.u32 %v4706_v16, %v3243_v15  ;;  %v4784_v8 = vld [vmem:[%s7237_s2 + $0x2cc] sm:$0xf] }
  0x46   :  { %986 = vmatpush.bf16.msra.mxu2 %v3580_v26  ;;  %952 = vmatmul.bf16.vlgmr.msrb.gmra.mxu3 %v5423_v60  ;;  %v3499_v20 = vld [vmem:[%s7237_s2 + $0x248] sm:$0xf]  ;;  %v4770_v21 = vld [vmem:[%s7237_s2 + $0x254] sm:$0xf0]  ;;  %v3372_v25 = vor.u32 %v4738_v19, %v3371_v17  ;;  %v3565_v9 = vld [vmem:[%s7237_s2 + $0x2d8] sm:$0xf0] }
  0x47   :  { %1000 = vmatpush.bf16.msra.mxu3 %v3708_v30  ;;  %v3627_v22 = vld [vmem:[%s7237_s2 + $0x348] sm:$0xf]  ;;  %v4802_v23 = vld [vmem:[%s7237_s2 + $0x354] sm:$0xf0]  ;;  %v3500_v26 = vor.u32 %v4770_v21, %v3499_v20  ;;  %v4816_v10 = vld [vmem:[%s7237_s2 + $0x3cc] sm:$0xf] }
  0x48   :  { %959 = vmatpush.bf16.msra.mxu0 %v3308_v36  ;;  %v3227_v27 = vld [vmem:[%s7237_s2 + $0x28] sm:$0xf]  ;;  %v4702_v28 = vld [vmem:[%s7237_s2 + $0x34] sm:$0xf0]  ;;  %v3628_v30 = vor.u32 %v4802_v23, %v3627_v22  ;;  %v3693_v11 = vld [vmem:[%s7237_s2 + $0x3d8] sm:$0xf0] }
  0x49   :  { %973 = vmatpush.bf16.msra.mxu1 %v3436_v37  ;;  %v3355_v29 = vld [vmem:[%s7237_s2 + $0x128] sm:$0xf]  ;;  %v4734_v31 = vld [vmem:[%s7237_s2 + $0x134] sm:$0xf0]  ;;  %v3228_v36 = vor.u32 %v4702_v28, %v3227_v27  ;;  %v4716_v15 = vld [vmem:[%s7237_s2 + $0xac] sm:$0xf] }
  0x4a   :  { %987 = vmatpush.bf16.msra.mxu2 %v3564_v38  ;;  %v3483_v32 = vld [vmem:[%s7237_s2 + $0x228] sm:$0xf]  ;;  %v4766_v33 = vld [vmem:[%s7237_s2 + $0x234] sm:$0xf0]  ;;  %v3356_v39 = vor.u32 %v4734_v31, %v3355_v29  ;;  %v3293_v16 = vld [vmem:[%s7237_s2 + $0xb8] sm:$0xf0] }
  0x4b   :  { %1001 = vmatpush.bf16.msra.mxu3 %v3692_v42  ;;  %v3611_v34 = vld [vmem:[%s7237_s2 + $0x328] sm:$0xf]  ;;  %v4798_v35 = vld [vmem:[%s7237_s2 + $0x334] sm:$0xf0]  ;;  %v3484_v40 = vor.u32 %v4766_v33, %v3483_v32  ;;  %v4748_v17 = vld [vmem:[%s7237_s2 + $0x1ac] sm:$0xf] }
  0x4c   :  { %960 = vmatpush.bf16.msra.mxu0 %v3292_v48  ;;  %v3211_v37 = vld [vmem:[%s7237_s2 + $0x8] sm:$0xf]  ;;  %v4698_v38 = vld [vmem:[%s7237_s2 + $0x14] sm:$0xf0]  ;;  %v3612_v44 = vor.u32 %v4798_v35, %v3611_v34  ;;  %v4724_v48 = vld [vmem:[%s7237_s2 + $0xec] sm:$0xf] }
  0x4d   :  { %974 = vmatpush.bf16.msra.mxu1 %v3420_v49  ;;  %v3339_v41 = vld [vmem:[%s7237_s2 + $0x108] sm:$0xf]  ;;  %v4730_v42 = vld [vmem:[%s7237_s2 + $0x114] sm:$0xf0]  ;;  %v3325_v49 = vld [vmem:[%s7237_s2 + $0xf8] sm:$0xf0]  ;;  %v3212_v51 = vor.u32 %v4698_v38, %v3211_v37 }
  0x4e   :  { %988 = vmatpush.bf16.msra.mxu2 %v3548_v50  ;;  %v3467_v43 = vld [vmem:[%s7237_s2 + $0x208] sm:$0xf]  ;;  %v4762_v45 = vld [vmem:[%s7237_s2 + $0x214] sm:$0xf0]  ;;  %v4756_v50 = vld [vmem:[%s7237_s2 + $0x1ec] sm:$0xf]  ;;  %v3340_v56 = vor.u32 %v4730_v42, %v3339_v41 }
  0x4f   :  { %1002 = vmatpush.bf16.msra.mxu3 %v3676_v54  ;;  %v3595_v46 = vld [vmem:[%s7237_s2 + $0x308] sm:$0xf]  ;;  %v4794_v47 = vld [vmem:[%s7237_s2 + $0x314] sm:$0xf0]  ;;  %v3581_v54 = vld [vmem:[%s7237_s2 + $0x2f8] sm:$0xf0]  ;;  %v3468_v57 = vor.u32 %v4762_v45, %v3467_v43 }
  0x50   :  { %961 = vmatpush.bf16.msra.mxu0 %v3276_v63  ;;  %v3596_v62 = vor.u32 %v4794_v47, %v3595_v46  ;;  %v3328_v63 = vor.u32 %v4724_v48, %v3325_v49  ;;  %v3421_v19 = vld [vmem:[%s7237_s2 + $0x1b8] sm:$0xf0]  ;;  %v4780_v20 = vld [vmem:[%s7237_s2 + $0x2ac] sm:$0xf] }
  0x51   :  { %975 = vmatpush.bf16.msra.mxu1 %v3404_v1  ;;  %v3456_v1 = vor.u32 %v4756_v50, %v3453_v52  ;;  %v3549_v21 = vld [vmem:[%s7237_s2 + $0x2b8] sm:$0xf0]  ;;  %v4812_v22 = vld [vmem:[%s7237_s2 + $0x3ac] sm:$0xf] }
  0x52   :  { %989 = vmatpush.bf16.msra.mxu2 %v3532_v2  ;;  %v3584_v2 = vor.u32 %v4788_v53, %v3581_v54  ;;  %v3677_v23 = vld [vmem:[%s7237_s2 + $0x3b8] sm:$0xf0]  ;;  %v4712_v27 = vld [vmem:[%s7237_s2 + $0x8c] sm:$0xf] }
  0x53   :  { %1003 = vmatpush.bf16.msra.mxu3 %v3660_v6  ;;  %v3712_v6 = vor.u32 %v4820_v58, %v3709_v61  ;;  %v3277_v28 = vld [vmem:[%s7237_s2 + $0x98] sm:$0xf0]  ;;  %v4744_v29 = vld [vmem:[%s7237_s2 + $0x18c] sm:$0xf] }
  0x54   :  { %962 = vmatpush.bf16.msra.mxu0 %v3260_v12  ;;  %v3312_v12 = vor.u32 %v4720_v3, %v3309_v4  ;;  %v3405_v31 = vld [vmem:[%s7237_s2 + $0x198] sm:$0xf0]  ;;  %v4776_v32 = vld [vmem:[%s7237_s2 + $0x28c] sm:$0xf] }
  0x55   :  { %976 = vmatpush.bf16.msra.mxu1 %v3388_v13  ;;  %v3440_v13 = vor.u32 %v4752_v5, %v3437_v7  ;;  %v3533_v33 = vld [vmem:[%s7237_s2 + $0x298] sm:$0xf0]  ;;  %v4808_v34 = vld [vmem:[%s7237_s2 + $0x38c] sm:$0xf]  ;;  %v3408_v37 = vor.u32 %v4744_v29, %v3405_v31  ;;  %v3955_v31 = vld [vmem:[%s7239_s4 + $0x1e0] sm:$0xf] }
  0x56   :  { %990 = vmatpush.bf16.msra.mxu2 %v3516_v14  ;;  %v3568_v14 = vor.u32 %v4784_v8, %v3565_v9  ;;  %v3661_v35 = vld [vmem:[%s7237_s2 + $0x398] sm:$0xf0]  ;;  %v3536_v38 = vor.u32 %v4776_v32, %v3533_v33  ;;  %v4740_v41 = vld [vmem:[%s7237_s2 + $0x16c] sm:$0xf]  ;;  %v4885_v32 = vld [vmem:[%s7239_s4 + $0x1ec] sm:$0xf0] }
  0x57   :  { %1004 = vmatpush.bf16.msra.mxu3 %v3644_v18  ;;  %v3696_v18 = vor.u32 %v4816_v10, %v3693_v11  ;;  %v3664_v42 = vor.u32 %v4808_v34, %v3661_v35  ;;  %v3389_v43 = vld [vmem:[%s7237_s2 + $0x178] sm:$0xf0]  ;;  %v4804_v46 = vld [vmem:[%s7237_s2 + $0x36c] sm:$0xf]  ;;  %v3811_v33 = vld [vmem:[%s7239_s4 + $0xc0] sm:$0xf]  ;;  %v3956_v35 = vor.u32 %v4885_v32, %v3955_v31 }
  0x58   :  { %963 = vmatpush.bf16.msra.mxu0 %v3244_v24  ;;  %v3296_v24 = vor.u32 %v4716_v15, %v3293_v16  ;;  %v3517_v45 = vld [vmem:[%s7237_s2 + $0x278] sm:$0xf0]  ;;  %v3392_v49 = vor.u32 %v4740_v41, %v3389_v43  ;;  %v4736_v53 = vld [vmem:[%s7237_s2 + $0x14c] sm:$0xf]  ;;  %v4849_v34 = vld [vmem:[%s7239_s4 + $0xcc] sm:$0xf0] }
  0x59   :  { %977 = vmatpush.bf16.msra.mxu1 %v3372_v25  ;;  %v3424_v25 = vor.u32 %v4748_v17, %v3421_v19  ;;  %v3645_v47 = vld [vmem:[%s7237_s2 + $0x378] sm:$0xf0]  ;;  %v4800_v61 = vld [vmem:[%s7237_s2 + $0x34c] sm:$0xf]  ;;  %v4841_v43 = vld [vmem:[%s7239_s4 + $0x8c] sm:$0xf0] }
  0x5a   :  { %991 = vmatpush.bf16.msra.mxu2 %v3500_v26  ;;  %v3552_v26 = vor.u32 %v4780_v20, %v3549_v21  ;;  %v3245_v52 = vld [vmem:[%s7237_s2 + $0x58] sm:$0xf0]  ;;  %v3648_v54 = vor.u32 %v4804_v46, %v3645_v47  ;;  %v4700_v3 = vld [vmem:[%s7237_s2 + $0x2c] sm:$0xf]  ;;  %v4837_v46 = vld [vmem:[%s7239_s4 + $0x6c] sm:$0xf0] }
  0x5b   :  { %1005 = vmatpush.bf16.msra.mxu3 %v3628_v30  ;;  %v3680_v30 = vor.u32 %v4812_v22, %v3677_v23  ;;  %v3501_v58 = vld [vmem:[%s7237_s2 + $0x258] sm:$0xf0]  ;;  %v4732_v5 = vld [vmem:[%s7237_s2 + $0x12c] sm:$0xf]  ;;  %v6118_v31 = vld [vmem:[%s7240_s3] sm:$0xf] }
  0x5c   :  { %964 = vmatpush.bf16.msra.mxu0 %v3228_v36  ;;  %v3280_v36 = vor.u32 %v4712_v27, %v3277_v28  ;;  %v3229_v4 = vld [vmem:[%s7237_s2 + $0x38] sm:$0xf0]  ;;  %v4764_v8 = vld [vmem:[%s7237_s2 + $0x22c] sm:$0xf] }
  0x5d   :  { %978 = vmatpush.bf16.msra.mxu1 %v3356_v39  ;;  %v4708_v39 = vld [vmem:[%s7237_s2 + $0x6c] sm:$0xf]  ;;  %v3357_v7 = vld [vmem:[%s7237_s2 + $0x138] sm:$0xf0] }
  0x5e   :  { %992 = vmatpush.bf16.msra.mxu2 %v3484_v40  ;;  %v3261_v40 = vld [vmem:[%s7237_s2 + $0x78] sm:$0xf0]  ;;  %v4796_v10 = vld [vmem:[%s7237_s2 + $0x32c] sm:$0xf] }
  0x5f   :  { %1006 = vmatpush.bf16.msra.mxu3 %v3612_v44  ;;  %v4772_v44 = vld [vmem:[%s7237_s2 + $0x26c] sm:$0xf]  ;;  %v3264_v48 = vor.u32 %v4708_v39, %v3261_v40  ;;  %v3485_v9 = vld [vmem:[%s7237_s2 + $0x238] sm:$0xf0]  ;;  %v3795_v39 = vld [vmem:[%s7239_s4 + $0xa0] sm:$0xf] }
  0x60   :  { %965 = vmatpush.bf16.msra.mxu0 %v3212_v51  ;;  %v3520_v50 = vor.u32 %v4772_v44, %v3517_v45  ;;  %v4704_v51 = vld [vmem:[%s7237_s2 + $0x4c] sm:$0xf]  ;;  %v3613_v11 = vld [vmem:[%s7237_s2 + $0x338] sm:$0xf0]  ;;  %v3488_v15 = vor.u32 %v4764_v8, %v3485_v9  ;;  %v4845_v40 = vld [vmem:[%s7239_s4 + $0xac] sm:$0xf0] }
  0x61   :  { %979 = vmatpush.bf16.msra.mxu1 %v3340_v56  ;;  %v3373_v56 = vld [vmem:[%s7237_s2 + $0x158] sm:$0xf0]  ;;  %v4728_v17 = vld [vmem:[%s7237_s2 + $0x10c] sm:$0xf]  ;;  %v3616_v19 = vor.u32 %v4796_v10, %v3613_v11  ;;  %v3923_v44 = vld [vmem:[%s7239_s4 + $0x1a0] sm:$0xf] }
  0x62   :  { %993 = vmatpush.bf16.msra.mxu2 %v3468_v57  ;;  %v4768_v57 = vld [vmem:[%s7237_s2 + $0x24c] sm:$0xf]  ;;  %v3213_v16 = vld [vmem:[%s7237_s2 + $0x18] sm:$0xf0]  ;;  %v3763_v45 = vld [vmem:[%s7239_s4 + $0x60] sm:$0xf] }
  0x63   :  { %1007 = vmatpush.bf16.msra.mxu3 %v3596_v62  ;;  %966 = vmatmul.bf16.vlgmr.msra.gmra.mxu0 %v5421_v59  ;;  %v3629_v62 = vld [vmem:[%s7237_s2 + $0x358] sm:$0xf0]  ;;  %v4760_v20 = vld [vmem:[%s7237_s2 + $0x20c] sm:$0xf]  ;;  %v3764_v47 = vor.u32 %v4837_v46, %v3763_v45  ;;  %v3859_v8 = vld [vmem:[%s7239_s4 + $0x120] sm:$0xf] }
  0x64   :  { %1014 = vmatpush.bf16.msrb.mxu0 %v3328_v63  ;;  %980 = vmatmul.bf16.vlgmr.msra.gmra.mxu1 %v5431_v0  ;;  %v3248_v63 = vor.u32 %v4704_v51, %v3245_v52  ;;  %v3469_v21 = vld [vmem:[%s7237_s2 + $0x218] sm:$0xf0]  ;;  %v4792_v22 = vld [vmem:[%s7237_s2 + $0x30c] sm:$0xf]  ;;  %v4833_v51 = vld [vmem:[%s7239_s4 + $0x4c] sm:$0xf0] }
  0x65   :  { %1028 = vmatpush.bf16.msrb.mxu1 %v3456_v1  ;;  %994 = vmatmul.bf16.vlgmr.msra.gmra.mxu2 %v5410_v55  ;;  %v3376_v1 = vor.u32 %v4736_v53, %v3373_v56  ;;  %v3597_v23 = vld [vmem:[%s7237_s2 + $0x318] sm:$0xf0]  ;;  %v3472_v28 = vor.u32 %v4760_v20, %v3469_v21  ;;  %v4869_v56 = vld [vmem:[%s7239_s4 + $0x16c] sm:$0xf0]  ;;  %v4847_v11 = vld [vmem:[%s7239_s4 + $0xc4] sm:$0xf] }
  0x66   :  { %1042 = vmatpush.bf16.msrb.mxu2 %v3584_v2  ;;  %1008 = vmatmul.bf16.vlgmr.msra.gmra.mxu3 %v5423_v60  ;;  %v3504_v2 = vor.u32 %v4768_v57, %v3501_v58  ;;  %v3600_v29 = vor.u32 %v4792_v22, %v3597_v23  ;;  %v3731_v57 = vld [vmem:[%s7239_s4 + $0x20] sm:$0xf]  ;;  %v4829_v58 = vld [vmem:[%s7239_s4 + $0x2c] sm:$0xf0]  ;;  %v4843_v21 = vld [vmem:[%s7239_s4 + $0xa4] sm:$0xf] }
  0x67   :  { %1056 = vmatpush.bf16.msrb.mxu3 %v3712_v6  ;;  %v3632_v6 = vor.u32 %v4800_v61, %v3629_v62  ;;  %v3732_v62 = vor.u32 %v4829_v58, %v3731_v57  ;;  %v4861_v9 = vld [vmem:[%s7239_s4 + $0x12c] sm:$0xf0]  ;;  %v3797_v22 = vld [vmem:[%s7239_s4 + $0xb0] sm:$0xf0]  ;;  %v4035_v46 = vld [vmem:[%s7239_s4 + $0x280] sm:$0xf] }
  0x68   :  { %1015 = vmatpush.bf16.msrb.mxu0 %v3312_v12  ;;  %v3232_v12 = vor.u32 %v4700_v3, %v3229_v4  ;;  %v4825_v3 = vld [vmem:[%s7239_s4 + $0xc] sm:$0xf0] }
  0x69   :  { %1029 = vmatpush.bf16.msrb.mxu1 %v3440_v13  ;;  %v4696_v13 = vld [vmem:[%s7237_s2 + $0xc] sm:$0xf] }
  0x6a   :  { %1043 = vmatpush.bf16.msrb.mxu2 %v3568_v14  ;;  %v3360_v14 = vor.u32 %v4732_v5, %v3357_v7  ;;  %v4851_v5 = vld [vmem:[%s7239_s4 + $0xe4] sm:$0xf] }
  0x6b   :  { %1057 = vmatpush.bf16.msrb.mxu3 %v3696_v18  ;;  %v3341_v18 = vld [vmem:[%s7237_s2 + $0x118] sm:$0xf0] }
  0x6c   :  { %1016 = vmatpush.bf16.msrb.mxu0 %v3296_v24  ;;  %v3827_v24 = vld [vmem:[%s7239_s4 + $0xe0] sm:$0xf]  ;;  %v3344_v27 = vor.u32 %v4728_v17, %v3341_v18  ;;  %v4917_v18 = vld [vmem:[%s7239_s4 + $0x2ec] sm:$0xf0] }
  0x6d   :  { %1030 = vmatpush.bf16.msrb.mxu1 %v3424_v25  ;;  %v4853_v25 = vld [vmem:[%s7239_s4 + $0xec] sm:$0xf0]  ;;  %v4083_v17 = vld [vmem:[%s7239_s4 + $0x2e0] sm:$0xf] }
  0x6e   :  { %1044 = vmatpush.bf16.msrb.mxu2 %v3552_v26  ;;  %v3216_v26 = vor.u32 %v4696_v13, %v3213_v16  ;;  %v3813_v13 = vld [vmem:[%s7239_s4 + $0xd0] sm:$0xf0]  ;;  %v4084_v23 = vor.u32 %v4917_v18, %v4083_v17 }
  0x6f   :  { %1058 = vmatpush.bf16.msrb.mxu3 %v3680_v30  ;;  %v3828_v30 = vor.u32 %v4853_v25, %v3827_v24  ;;  %v3816_v20 = vor.u32 %v4847_v11, %v3813_v13  ;;  %v3957_v24 = vld [vmem:[%s7239_s4 + $0x1f0] sm:$0xf0]  ;;  %v4897_v13 = vld [vmem:[%s7239_s4 + $0x24c] sm:$0xf0] }
  0x70   :  { %1017 = vmatpush.bf16.msrb.mxu0 %v3280_v36  ;;  %v3939_v36 = vld [vmem:[%s7239_s4 + $0x1c0] sm:$0xf]  ;;  %v3717_v17 = vld [vmem:[%s7239_s4 + $0x10] sm:$0xf0] }
  0x71   :  { %1031 = vmatpush.bf16.msrb.mxu1 %v3408_v37  ;;  %v4881_v37 = vld [vmem:[%s7239_s4 + $0x1cc] sm:$0xf0] }
  0x72   :  { %1045 = vmatpush.bf16.msrb.mxu2 %v3536_v38  ;;  %v3812_v38 = vor.u32 %v4849_v34, %v3811_v33  ;;  %v3940_v41 = vor.u32 %v4881_v37, %v3939_v36  ;;  %v3800_v33 = vor.u32 %v4843_v21, %v3797_v22  ;;  %v4839_v34 = vld [vmem:[%s7239_s4 + $0x84] sm:$0xf]  ;;  %v178_v36 = vperm.slane %v6118_v31, 0 }
  0x73   :  { %1059 = vmatpush.bf16.msrb.mxu3 %v3664_v42  ;;  %v3796_v42 = vor.u32 %v4845_v40, %v3795_v39  ;;  %v4909_v39 = vld [vmem:[%s7239_s4 + $0x2ac] sm:$0xf0]  ;;  %v4875_v40 = vld [vmem:[%s7239_s4 + $0x1a4] sm:$0xf] }
  0x74   :  { %1018 = vmatpush.bf16.msrb.mxu0 %v3264_v48  ;;  %v3907_v48 = vld [vmem:[%s7239_s4 + $0x180] sm:$0xf] }
  0x75   :  { %1032 = vmatpush.bf16.msrb.mxu1 %v3392_v49  ;;  %v4873_v49 = vld [vmem:[%s7239_s4 + $0x18c] sm:$0xf0] }
  0x76   :  { %1046 = vmatpush.bf16.msrb.mxu2 %v3520_v50  ;;  %v3747_v50 = vld [vmem:[%s7239_s4 + $0x40] sm:$0xf]  ;;  %v3908_v52 = vor.u32 %v4873_v49, %v3907_v48  ;;  %v4871_v48 = vld [vmem:[%s7239_s4 + $0x184] sm:$0xf] }
  0x77   :  { %1060 = vmatpush.bf16.msrb.mxu3 %v3648_v54  ;;  %v3748_v53 = vor.u32 %v4833_v51, %v3747_v50  ;;  %v3891_v54 = vld [vmem:[%s7239_s4 + $0x160] sm:$0xf]  ;;  %v4831_v50 = vld [vmem:[%s7239_s4 + $0x44] sm:$0xf]  ;;  %v3749_v51 = vld [vmem:[%s7239_s4 + $0x50] sm:$0xf0] }
  0x78   :  { %1019 = vmatpush.bf16.msrb.mxu0 %v3248_v63  ;;  %v3892_v61 = vor.u32 %v4869_v56, %v3891_v54  ;;  %v3875_v63 = vld [vmem:[%s7239_s4 + $0x140] sm:$0xf]  ;;  %v3752_v58 = vor.u32 %v4831_v50, %v3749_v51  ;;  %v4945_v51 = vld [vmem:[%s7239_s4 + $0x3cc] sm:$0xf0] }
  0x79   :  { %1033 = vmatpush.bf16.msrb.mxu1 %v3376_v1  ;;  %v4865_v1 = vld [vmem:[%s7239_s4 + $0x14c] sm:$0xf0]  ;;  %v4195_v50 = vld [vmem:[%s7239_s4 + $0x3c0] sm:$0xf] }
  0x7a   :  { %1047 = vmatpush.bf16.msrb.mxu2 %v3504_v2  ;;  %v3715_v2 = vld [vmem:[%s7239_s4] sm:$0xf]  ;;  %v3876_v4 = vor.u32 %v4865_v1, %v3875_v63  ;;  %v4867_v63 = vld [vmem:[%s7239_s4 + $0x164] sm:$0xf] }
  0x7b   :  { %1061 = vmatpush.bf16.msrb.mxu3 %v3632_v6  ;;  %v3829_v6 = vld [vmem:[%s7239_s4 + $0xf0] sm:$0xf0]  ;;  %v3716_v7 = vor.u32 %v4825_v3, %v3715_v2  ;;  %v4827_v3 = vld [vmem:[%s7239_s4 + $0x24] sm:$0xf] }
  0x7c   :  { %1020 = vmatpush.bf16.msrb.mxu0 %v3232_v12  ;;  %v3832_v10 = vor.u32 %v4851_v5, %v3829_v6  ;;  %v3860_v12 = vor.u32 %v4861_v9, %v3859_v8  ;;  %v3893_v6 = vld [vmem:[%s7239_s4 + $0x170] sm:$0xf0] }
  0x7d   :  { %1034 = vmatpush.bf16.msrb.mxu1 %v3360_v14  ;;  %v3843_v14 = vld [vmem:[%s7239_s4 + $0x100] sm:$0xf]  ;;  %v3896_v9 = vor.u32 %v4867_v63, %v3893_v6  ;;  %v3787_v63 = vld [vmem:[%s7239_s4 + $0x88] sm:$0xf]  ;;  %v4053_v6 = vld [vmem:[%s7239_s4 + $0x2b0] sm:$0xf0] }
  0x7e   :  { %1048 = vmatpush.bf16.msrb.mxu2 %v3488_v15  ;;  %v4857_v15 = vld [vmem:[%s7239_s4 + $0x10c] sm:$0xf0] }
  0x7f   :  { %1062 = vmatpush.bf16.msrb.mxu3 %v3616_v19  ;;  %v3844_v16 = vor.u32 %v4857_v15, %v3843_v14  ;;  %v4883_v19 = vld [vmem:[%s7239_s4 + $0x1e4] sm:$0xf] }
  0x80   :  { %1021 = vmatpush.bf16.msrb.mxu0 %v3216_v26  ;;  %v3960_v25 = vor.u32 %v4883_v19, %v3957_v24  ;;  %v4067_v26 = vld [vmem:[%s7239_s4 + $0x2c0] sm:$0xf]  ;;  %v4863_v14 = vld [vmem:[%s7239_s4 + $0x144] sm:$0xf]  ;;  %v3877_v19 = vld [vmem:[%s7239_s4 + $0x150] sm:$0xf0] }
  0x81   :  { %1035 = vmatpush.bf16.msrb.mxu1 %v3344_v27  ;;  %v4913_v27 = vld [vmem:[%s7239_s4 + $0x2cc] sm:$0xf0]  ;;  %v3880_v21 = vor.u32 %v4863_v14, %v3877_v19  ;;  %v3835_v24 = vld [vmem:[%s7239_s4 + $0xe8] sm:$0xf]  ;;  %v4163_v14 = vld [vmem:[%s7239_s4 + $0x380] sm:$0xf] }
  0x82   :  { %1049 = vmatpush.bf16.msrb.mxu2 %v3472_v28  ;;  %v4879_v28 = vld [vmem:[%s7239_s4 + $0x1c4] sm:$0xf] }
  0x83   :  { %1063 = vmatpush.bf16.msrb.mxu3 %v3600_v29  ;;  %1022 = vmatmul.bf16.vlgmr.msrb.gmra.mxu0 %v5421_v59  ;;  %v3779_v59 = vld [vmem:[%s7239_s4 + $0x80] sm:$0xf]  ;;  %v4068_v29 = vor.u32 %v4913_v27, %v4067_v26  ;;  %v4893_v27 = vld [vmem:[%s7239_s4 + $0x22c] sm:$0xf0] }
  0x84   :  { %1860 = vmatpush.bf16.msra.mxu0 %v3828_v30  ;;  %1036 = vmatmul.bf16.vlgmr.msrb.gmra.mxu1 %v5431_v0  ;;  %v3941_v30 = vld [vmem:[%s7239_s4 + $0x1d0] sm:$0xf0]  ;;  %v3987_v26 = vld [vmem:[%s7239_s4 + $0x220] sm:$0xf] }
  0x85   :  { %1874 = vmatpush.bf16.msra.mxu1 %v3956_v35  ;;  %1050 = vmatmul.bf16.vlgmr.msrb.gmra.mxu2 %v5410_v55  ;;  %v4877_v55 = vld [vmem:[%s7239_s4 + $0x1ac] sm:$0xf0]  ;;  %v3944_v32 = vor.u32 %v4879_v28, %v3941_v30  ;;  %v3781_v35 = vld [vmem:[%s7239_s4 + $0x90] sm:$0xf0]  ;;  %v4859_v28 = vld [vmem:[%s7239_s4 + $0x124] sm:$0xf] }
  0x86   :  { %1064 = vmatmul.bf16.vlgmr.msrb.gmra.mxu3 %v5423_v60  ;;  %v3780_v60 = vor.u32 %v4841_v43, %v3779_v59  ;;  %v3924_v0 = vor.u32 %v4877_v55, %v3923_v44  ;;  %1888 = vmatpush.bf16.msra.mxu2 %v4084_v23  ;;  %v3784_v37 = vor.u32 %v4839_v34, %v3781_v35  ;;  %v3765_v59 = vld [vmem:[%s7239_s4 + $0x70] sm:$0xf0] }
  0x87   :  { %v3925_v44 = vld [vmem:[%s7239_s4 + $0x1b0] sm:$0xf0] }
  0x88   :  { %1861 = vmatpush.bf16.msra.mxu0 %v3812_v38  ;;  %v4051_v38 = vld [vmem:[%s7239_s4 + $0x2a0] sm:$0xf]  ;;  %v3861_v34 = vld [vmem:[%s7239_s4 + $0x130] sm:$0xf0] }
  0x89   :  { %1875 = vmatpush.bf16.msra.mxu1 %v3940_v41  ;;  %v4052_v43 = vor.u32 %v4909_v39, %v4051_v38  ;;  %v3864_v35 = vor.u32 %v4859_v28, %v3861_v34  ;;  %v4889_v38 = vld [vmem:[%s7239_s4 + $0x20c] sm:$0xf0]  ;;  %v4899_v28 = vld [vmem:[%s7239_s4 + $0x264] sm:$0xf] }
  0x8a   :  { %1889 = vmatpush.bf16.msra.mxu2 %v4068_v29 }
  0x8c   :  { %1862 = vmatpush.bf16.msra.mxu0 %v3796_v42  ;;  %v4835_v42 = vld [vmem:[%s7239_s4 + $0x64] sm:$0xf] }
  0x8d   :  { %1876 = vmatpush.bf16.msra.mxu1 %v3924_v0  ;;  %v3928_v0 = vor.u32 %v4875_v40, %v3925_v44  ;;  %v3768_v45 = vor.u32 %v4835_v42, %v3765_v59  ;;  %v3819_v40 = vld [vmem:[%s7239_s4 + $0xc8] sm:$0xf]  ;;  %v4855_v42 = vld [vmem:[%s7239_s4 + $0x104] sm:$0xf]  ;;  %v3845_v59 = vld [vmem:[%s7239_s4 + $0x110] sm:$0xf0] }
  0x8e   :  { %1890 = vmatpush.bf16.msra.mxu2 %v4052_v43  ;;  %v4850_v44 = vld [vmem:[%s7239_s4 + $0xd4] sm:$0xf0] }
  0x90   :  { %1863 = vmatpush.bf16.msra.mxu0 %v3780_v60 }
  0x91   :  { %1877 = vmatpush.bf16.msra.mxu1 %v3908_v52 }
  0x94   :  { %1864 = vmatpush.bf16.msra.mxu0 %v3764_v47  ;;  %v4905_v47 = vld [vmem:[%s7239_s4 + $0x28c] sm:$0xf0] }
  0x95   :  { %1878 = vmatpush.bf16.msra.mxu1 %v3892_v61  ;;  %v4036_v52 = vor.u32 %v4905_v47, %v4035_v46  ;;  %v4019_v61 = vld [vmem:[%s7239_s4 + $0x260] sm:$0xf]  ;;  %v4915_v46 = vld [vmem:[%s7239_s4 + $0x2e4] sm:$0xf]  ;;  %v4085_v47 = vld [vmem:[%s7239_s4 + $0x2f0] sm:$0xf0] }
  0x97   :  { %1891 = vmatpush.bf16.msra.mxu2 %v4036_v52  ;;  %v4911_v52 = vld [vmem:[%s7239_s4 + $0x2c4] sm:$0xf] }
  0x98   :  { %1865 = vmatpush.bf16.msra.mxu0 %v3748_v53  ;;  %v3909_v53 = vld [vmem:[%s7239_s4 + $0x190] sm:$0xf0] }
  0x99   :  { %1879 = vmatpush.bf16.msra.mxu1 %v3876_v4  ;;  %v3912_v56 = vor.u32 %v4871_v48, %v3909_v53  ;;  %v3733_v4 = vld [vmem:[%s7239_s4 + $0x30] sm:$0xf0]  ;;  %v4088_v48 = vor.u32 %v4915_v46, %v4085_v47  ;;  %v3803_v53 = vld [vmem:[%s7239_s4 + $0xa8] sm:$0xf] }
  0x9a   :  { %v3736_v11 = vor.u32 %v4827_v3, %v3733_v4  ;;  %v4941_v3 = vld [vmem:[%s7239_s4 + $0x3ac] sm:$0xf0]  ;;  %v4907_v4 = vld [vmem:[%s7239_s4 + $0x2a4] sm:$0xf]  ;;  %v3723_v47 = vld [vmem:[%s7239_s4 + $0x8] sm:$0xf] }
  0x9c   :  { %1866 = vmatpush.bf16.msra.mxu0 %v3732_v62  ;;  %v4901_v62 = vld [vmem:[%s7239_s4 + $0x26c] sm:$0xf0] }
  0x9d   :  { %1880 = vmatpush.bf16.msra.mxu1 %v3860_v12  ;;  %v4020_v5 = vor.u32 %v4901_v62, %v4019_v61  ;;  %v4003_v12 = vld [vmem:[%s7239_s4 + $0x240] sm:$0xf]  ;;  %v179_v61 = vperm.slane %v6118_v31, 1 }
  0x9e   :  { %v4004_v18 = vor.u32 %v4897_v13, %v4003_v12  ;;  %v3771_v12 = vld [vmem:[%s7239_s4 + $0x68] sm:$0xf]  ;;  %v4838_v13 = vld [vmem:[%s7239_s4 + $0x74] sm:$0xf0] }
  0x9f   :  { %1892 = vmatpush.bf16.msra.mxu2 %v4020_v5 }
  0xa0   :  { %1867 = vmatpush.bf16.msra.mxu0 %v3716_v7 }
  0xa1   :  { %1881 = vmatpush.bf16.msra.mxu1 %v3844_v16  ;;  %v869_v60 = vpop.f32.mrf.mxu1  ;;  %v4823_v16 = vld [vmem:[%s7239_s4 + $0x4] sm:$0xf] }
  0xa3   :  { %v855_v41 = vpop.f32.mrf.mxu0  ;;  %1893 = vmatpush.bf16.msra.mxu2 %v4004_v18  ;;  %v4037_v18 = vld [vmem:[%s7239_s4 + $0x290] sm:$0xf0] }
  0xa4   :  { %1916 = vmatpush.bf16.msrb.mxu0 %v3832_v10  ;;  %v856_v55 = vadd.f32 %v855_v41, %v178_v36 }
  0xa5   :  { %1930 = vmatpush.bf16.msrb.mxu1 %v3960_v25  ;;  %v3720_v25 = vor.u32 %v4823_v16, %v3717_v17  ;;  %v4903_v16 = vld [vmem:[%s7239_s4 + $0x284] sm:$0xf] }
  0xa6   :  { %v870_v49 = vadd.f32 %v869_v60, %v856_v55  ;;  %v3848_v55 = vor.u32 %v4855_v42, %v3845_v59  ;;  %v4211_v60 = vld [vmem:[%s7239_s4 + $0x3e0] sm:$0xf] }
  0xa8   :  { %1917 = vmatpush.bf16.msrb.mxu0 %v3816_v20  ;;  %v883_v54 = vpop.f32.mrf.mxu2 }
  0xa9   :  { %1931 = vmatpush.bf16.msrb.mxu1 %v3944_v32  ;;  %v884_v1 = vadd.f32 %v883_v54, %v870_v49  ;;  %v871_v8 = vpop.f32.mrf.mxu1  ;;  %v4854_v32 = vld [vmem:[%s7239_s4 + $0xf4] sm:$0xf0]  ;;  %v3820_v49 = vor.u32 %v4850_v44, %v3819_v40  ;;  %v4131_v40 = vld [vmem:[%s7239_s4 + $0x340] sm:$0xf]  ;;  %v4895_v44 = vld [vmem:[%s7239_s4 + $0x244] sm:$0xf] }
  0xaa   :  { %v3836_v39 = vor.u32 %v4854_v32, %v3835_v24  ;;  %v4846_v54 = vld [vmem:[%s7239_s4 + $0xb4] sm:$0xf0] }
  0xab   :  { %v897_v57 = vpop.f32.mrf.mxu3  ;;  %v857_v2 = vpop.f32.mrf.mxu0  ;;  %v3804_v62 = vor.u32 %v4846_v54, %v3803_v53  ;;  %v4834_v24 = vld [vmem:[%s7239_s4 + $0x54] sm:$0xf0]  ;;  %v4891_v53 = vld [vmem:[%s7239_s4 + $0x224] sm:$0xf]  ;;  %v4852_v54 = vld [vmem:[%s7239_s4 + $0xec] sm:$0xf] }
  0xac   :  { %1918 = vmatpush.bf16.msrb.mxu0 %v3800_v33  ;;  %v858_v7 = vadd.f32 %v857_v2, %v178_v36  ;;  %v898_v15 = vadd.f32 %v897_v57, %v884_v1  ;;  %v3988_v33 = vor.u32 %v4893_v27, %v3987_v26  ;;  %v4069_v57 = vld [vmem:[%s7239_s4 + $0x2d0] sm:$0xf0]  ;;  %v4842_v1 = vld [vmem:[%s7239_s4 + $0x94] sm:$0xf0]  ;;  %v4179_v2 = vld [vmem:[%s7239_s4 + $0x3a0] sm:$0xf] }
  0xad   :  { %1932 = vmatpush.bf16.msrb.mxu1 %v3928_v0  ;;  %v4949_v0 = vld [vmem:[%s7239_s4 + $0x3ec] sm:$0xf0]  ;;  %v4180_v5 = vor.u32 %v4941_v3, %v4179_v2  ;;  %v4147_v26 = vld [vmem:[%s7239_s4 + $0x360] sm:$0xf] }
  0xae   :  { %v872_v10 = vadd.f32 %v871_v8, %v858_v7  ;;  %v1070_v29 = vmax.f32 %v898_v15, 0.0  ;;  %1894 = vmatpush.bf16.msra.mxu2 %v3988_v33  ;;  %v4056_v8 = vor.u32 %v4907_v4, %v4053_v6  ;;  %v4937_v15 = vld [vmem:[%s7239_s4 + $0x38c] sm:$0xf0]  ;;  %v4848_v4 = vld [vmem:[%s7239_s4 + $0xcc] sm:$0xf] }
  0xaf   :  { %v4164_v17 = vor.u32 %v4937_v15, %v4163_v14  ;;  %v4933_v27 = vld [vmem:[%s7239_s4 + $0x36c] sm:$0xf0]  ;;  %v3947_v15 = vld [vmem:[%s7239_s4 + $0x1c8] sm:$0xf] }
  0xb0   :  { %1919 = vmatpush.bf16.msrb.mxu0 %v3784_v37  ;;  %v885_v20 = vpop.f32.mrf.mxu2  ;;  %v3971_v37 = vld [vmem:[%s7239_s4 + $0x200] sm:$0xf] }
  0xb1   :  { %1933 = vmatpush.bf16.msrb.mxu1 %v3912_v56  ;;  %v886_v22 = vadd.f32 %v885_v20, %v872_v10  ;;  %v3972_v41 = vor.u32 %v4889_v38, %v3971_v37  ;;  %v4196_v56 = vor.u32 %v4945_v51, %v4195_v50  ;;  %v4040_v20 = vor.u32 %v4903_v16, %v4037_v18  ;;  %v3739_v38 = vld [vmem:[%s7239_s4 + $0x28] sm:$0xf]  ;;  %v4115_v51 = vld [vmem:[%s7239_s4 + $0x320] sm:$0xf]  ;;  %v4882_v16 = vld [vmem:[%s7239_s4 + $0x1d4] sm:$0xf0] }
  0xb2   :  { %v4947_v18 = vld [vmem:[%s7239_s4 + $0x3e4] sm:$0xf] }
  0xb3   :  { %v899_v23 = vpop.f32.mrf.mxu3  ;;  %1895 = vmatpush.bf16.msra.mxu2 %v3972_v41  ;;  %v4929_v41 = vld [vmem:[%s7239_s4 + $0x34c] sm:$0xf0] }
  0xb4   :  { %1920 = vmatpush.bf16.msrb.mxu0 %v3768_v45  ;;  %v900_v30 = vadd.f32 %v899_v23, %v886_v22  ;;  %v4212_v45 = vor.u32 %v4949_v0, %v4211_v60  ;;  %v3772_v22 = vor.u32 %v4838_v13, %v3771_v12  ;;  %v3755_v23 = vld [vmem:[%s7239_s4 + $0x48] sm:$0xf]  ;;  %v4132_v59 = vor.u32 %v4929_v41, %v4131_v40  ;;  %v4887_v12 = vld [vmem:[%s7239_s4 + $0x204] sm:$0xf]  ;;  %v3973_v13 = vld [vmem:[%s7239_s4 + $0x210] sm:$0xf0] }
  0xb5   :  { %1934 = vmatpush.bf16.msrb.mxu1 %v3896_v9  ;;  %v3756_v37 = vor.u32 %v4834_v24, %v3755_v23  ;;  %v3948_v23 = vor.u32 %v4882_v16, %v3947_v15  ;;  %v3805_v24 = vld [vmem:[%s7239_s4 + $0xb8] sm:$0xf0] }
  0xb6   :  { %v1074_v36 = vmax.f32 %v900_v30, 0.0  ;;  %1902 = vmatpush.bf16.msra.mxu3 %v4212_v45  ;;  %v4021_v30 = vld [vmem:[%s7239_s4 + $0x270] sm:$0xf0] }
  0xb7   :  { %1944 = vmatpush.bf16.msrb.mxu2 %v4088_v48  ;;  %v4024_v34 = vor.u32 %v4899_v28, %v4021_v30  ;;  %v4826_v48 = vld [vmem:[%s7239_s4 + $0x14] sm:$0xf0]  ;;  %v180_v30 = vperm.slane %v6118_v31, 2 }
  0xb8   :  { %1921 = vmatpush.bf16.msrb.mxu0 %v3752_v58  ;;  %v6232_v43 = vpack.c.bf16 %v1074_v36, %v1070_v29  ;;  %v4072_v58 = vor.u32 %v4911_v52, %v4069_v57  ;;  %v4148_v29 = vor.u32 %v4933_v27, %v4147_v26  ;;  %v4925_v52 = vld [vmem:[%s7239_s4 + $0x32c] sm:$0xf0]  ;;  %v3724_v3 = vor.u32 %v4826_v48, %v3723_v47  ;;  %v4197_v26 = vld [vmem:[%s7239_s4 + $0x3d0] sm:$0xf0]  ;;  %v3931_v27 = vld [vmem:[%s7239_s4 + $0x1a8] sm:$0xf] }
  0xb9   :  { %1935 = vmatpush.bf16.msrb.mxu1 %v3880_v21  ;;  %v4116_v57 = vor.u32 %v4925_v52, %v4115_v51  ;;  %v4878_v28 = vld [vmem:[%s7239_s4 + $0x1b4] sm:$0xf0]  ;;  %v3899_v47 = vld [vmem:[%s7239_s4 + $0x168] sm:$0xf]  ;;  %v4832_v52 = vld [vmem:[%s7239_s4 + $0x4c] sm:$0xf] }
  0xba   :  { %1868 = vmatmul.bf16.vlgmr.msra.gmra.mxu0 %v6232_v43  ;;  %1903 = vmatpush.bf16.msra.mxu3 %v4196_v56  ;;  %v3837_v56 = vld [vmem:[%s7239_s4 + $0xf8] sm:$0xf0]  ;;  %v4870_v48 = vld [vmem:[%s7239_s4 + $0x174] sm:$0xf0] }
  0xbb   :  { %1945 = vmatpush.bf16.msrb.mxu2 %v4072_v58  ;;  %v3989_v58 = vld [vmem:[%s7239_s4 + $0x230] sm:$0xf0]  ;;  %v3840_v6 = vor.u32 %v4852_v54, %v3837_v56  ;;  %v3900_v54 = vor.u32 %v4870_v48, %v3899_v47  ;;  %v3757_v56 = vld [vmem:[%s7239_s4 + $0x58] sm:$0xf0] }
  0xbc   :  { %1922 = vmatpush.bf16.msrb.mxu0 %v3736_v11  ;;  %v3788_v11 = vor.u32 %v4842_v1, %v3787_v63  ;;  %v3963_v63 = vld [vmem:[%s7239_s4 + $0x1e8] sm:$0xf]  ;;  %v4886_v1 = vld [vmem:[%s7239_s4 + $0x1f4] sm:$0xf0]  ;;  %v3992_v2 = vor.u32 %v4891_v53, %v3989_v58  ;;  %v4149_v58 = vld [vmem:[%s7239_s4 + $0x370] sm:$0xf0] }
  0xbd   :  { %1936 = vmatpush.bf16.msrb.mxu1 %v3864_v35 }
  0xbe   :  { %1904 = vmatpush.bf16.msra.mxu3 %v4180_v5 }
  0xbf   :  { %1946 = vmatpush.bf16.msrb.mxu2 %v4056_v8  ;;  %v4921_v8 = vld [vmem:[%s7239_s4 + $0x30c] sm:$0xf0] }
  0xc0   :  { %1923 = vmatpush.bf16.msrb.mxu0 %v3720_v25  ;;  %v911_v7 = vpop.f32.mrf.mxu0 }
  0xc1   :  { %1937 = vmatpush.bf16.msrb.mxu1 %v3848_v55  ;;  %v912_v9 = vadd.f32 %v911_v7, %v179_v61  ;;  %v925_v10 = vpop.f32.mrf.mxu1  ;;  %v4005_v55 = vld [vmem:[%s7239_s4 + $0x250] sm:$0xf0]  ;;  %v4099_v7 = vld [vmem:[%s7239_s4 + $0x300] sm:$0xf] }
  0xc2   :  { %1905 = vmatpush.bf16.msra.mxu3 %v4164_v17  ;;  %v4008_v0 = vor.u32 %v4895_v44, %v4005_v55  ;;  %v3976_v17 = vor.u32 %v4887_v12, %v3973_v13  ;;  %v3867_v12 = vld [vmem:[%s7239_s4 + $0x128] sm:$0xf]  ;;  %v4862_v13 = vld [vmem:[%s7239_s4 + $0x134] sm:$0xf0] }
  0xc3   :  { %v926_v19 = vadd.f32 %v925_v10, %v912_v9  ;;  %1947 = vmatpush.bf16.msrb.mxu2 %v4040_v20  ;;  %v3964_v9 = vor.u32 %v4886_v1, %v3963_v63  ;;  %v3821_v10 = vld [vmem:[%s7239_s4 + $0xd8] sm:$0xf0]  ;;  %v4866_v63 = vld [vmem:[%s7239_s4 + $0x154] sm:$0xf0] }
  0xc4   :  { %1972 = vmatpush.bf16.msra.mxu0 %v3836_v39  ;;  %v4830_v39 = vld [vmem:[%s7239_s4 + $0x34] sm:$0xf0]  ;;  %v3824_v20 = vor.u32 %v4848_v4, %v3821_v10  ;;  %v3760_v4 = vor.u32 %v4832_v52, %v3757_v56  ;;  %v4927_v10 = vld [vmem:[%s7239_s4 + $0x344] sm:$0xf]  ;;  %v3917_v56 = vld [vmem:[%s7239_s4 + $0x198] sm:$0xf0] }
  0xc5   :  { %v3740_v46 = vor.u32 %v4830_v39, %v3739_v38  ;;  %v3915_v38 = vld [vmem:[%s7239_s4 + $0x188] sm:$0xf]  ;;  %v4874_v39 = vld [vmem:[%s7239_s4 + $0x194] sm:$0xf0] }
  0xc6   :  { %1906 = vmatpush.bf16.msra.mxu3 %v4148_v29  ;;  %v4910_v52 = vld [vmem:[%s7239_s4 + $0x2b4] sm:$0xf0] }
  0xc7   :  { %1948 = vmatpush.bf16.msrb.mxu2 %v4024_v34  ;;  %v3932_v34 = vor.u32 %v4878_v28, %v3931_v27  ;;  %v3851_v27 = vld [vmem:[%s7239_s4 + $0x108] sm:$0xf]  ;;  %v4858_v28 = vld [vmem:[%s7239_s4 + $0x114] sm:$0xf0] }
  0xc8   :  { %1973 = vmatpush.bf16.msra.mxu0 %v3820_v49  ;;  %v939_v21 = vpop.f32.mrf.mxu2  ;;  %v913_v33 = vpop.f32.mrf.mxu0 }
  0xc9   :  { %v953_v25 = vpop.f32.mrf.mxu3  ;;  %v940_v32 = vadd.f32 %v939_v21, %v926_v19  ;;  %v914_v35 = vadd.f32 %v913_v33, %v179_v61  ;;  %v927_v36 = vpop.f32.mrf.mxu1  ;;  %v4213_v19 = vld [vmem:[%s7239_s4 + $0x3f0] sm:$0xf0]  ;;  %v4844_v21 = vld [vmem:[%s7239_s4 + $0xac] sm:$0xf] }
  0xca   :  { %1924 = vmatmul.bf16.vlgmr.msrb.gmra.mxu0 %v6232_v43  ;;  %1907 = vmatpush.bf16.msra.mxu3 %v4132_v59  ;;  %v4840_v33 = vld [vmem:[%s7239_s4 + $0x8c] sm:$0xf] }
  0xcb   :  { %v928_v42 = vadd.f32 %v927_v36, %v914_v35  ;;  %v954_v60 = vadd.f32 %v953_v25, %v940_v32  ;;  %1949 = vmatpush.bf16.msrb.mxu2 %v4008_v0  ;;  %v4943_v25 = vld [vmem:[%s7239_s4 + $0x3c4] sm:$0xf]  ;;  %v3808_v32 = vor.u32 %v4844_v21, %v3805_v24  ;;  %v3789_v35 = vld [vmem:[%s7239_s4 + $0x98] sm:$0xf0]  ;;  %v4836_v59 = vld [vmem:[%s7239_s4 + $0x6c] sm:$0xf]  ;;  %v3868_v21 = vor.u32 %v4862_v13, %v3867_v12 }
  0xcc   :  { %1974 = vmatpush.bf16.msra.mxu0 %v3804_v62  ;;  %v4200_v29 = vor.u32 %v4943_v25, %v4197_v26  ;;  %v4939_v36 = vld [vmem:[%s7239_s4 + $0x3a4] sm:$0xf]  ;;  %v3773_v0 = vld [vmem:[%s7239_s4 + $0x78] sm:$0xf0]  ;;  %v4117_v24 = vld [vmem:[%s7239_s4 + $0x330] sm:$0xf0] }
  0xcd   :  { %v1071_v61 = vmax.f32 %v954_v60, 0.0  ;;  %v3916_v60 = vor.u32 %v4874_v39, %v3915_v38  ;;  %v3776_v51 = vor.u32 %v4836_v59, %v3773_v0  ;;  %v3852_v38 = vor.u32 %v4858_v28, %v3851_v27  ;;  %v4919_v39 = vld [vmem:[%s7239_s4 + $0x304] sm:$0xf]  ;;  %v4075_v0 = vld [vmem:[%s7239_s4 + $0x2c8] sm:$0xf] }
  0xce   :  { %1908 = vmatpush.bf16.msra.mxu3 %v4116_v57  ;;  %v4931_v57 = vld [vmem:[%s7239_s4 + $0x364] sm:$0xf] }
  0xcf   :  { %1950 = vmatpush.bf16.msrb.mxu2 %v3992_v2  ;;  %v4152_v1 = vor.u32 %v4931_v57, %v4149_v58  ;;  %v181_v57 = vperm.slane %v6118_v31, 3  ;;  %v3901_v31 = vld [vmem:[%s7239_s4 + $0x178] sm:$0xf0] }
  0xd0   :  { %1975 = vmatpush.bf16.msra.mxu0 %v3788_v11  ;;  %v941_v45 = vpop.f32.mrf.mxu2  ;;  %v4100_v11 = vor.u32 %v4921_v8, %v4099_v7 }
  0xd1   :  { %v942_v49 = vadd.f32 %v941_v45, %v928_v42  ;;  %v955_v50 = vpop.f32.mrf.mxu3  ;;  %v3792_v42 = vor.u32 %v4840_v33, %v3789_v35  ;;  %v4935_v45 = vld [vmem:[%s7239_s4 + $0x384] sm:$0xf] }
  0xd2   :  { %1909 = vmatpush.bf16.msra.mxu3 %v4100_v11  ;;  %v4133_v11 = vld [vmem:[%s7239_s4 + $0x350] sm:$0xf0] }
  0xd3   :  { %v956_v62 = vadd.f32 %v955_v50, %v942_v49  ;;  %1951 = vmatpush.bf16.msrb.mxu2 %v3976_v17  ;;  %v4136_v16 = vor.u32 %v4927_v10, %v4133_v11  ;;  %v4864_v10 = vld [vmem:[%s7239_s4 + $0x14c] sm:$0xf]  ;;  %v3885_v11 = vld [vmem:[%s7239_s4 + $0x158] sm:$0xf0] }
  0xd4   :  { %1976 = vmatpush.bf16.msra.mxu0 %v3772_v22  ;;  %v4216_v22 = vor.u32 %v4947_v18, %v4213_v19  ;;  %v4824_v19 = vld [vmem:[%s7239_s4 + $0xc] sm:$0xf] }
  0xd5   :  { %v1075_v5 = vmax.f32 %v956_v62, 0.0  ;;  %v3883_v62 = vld [vmem:[%s7239_s4 + $0x148] sm:$0xf] }
  0xd6   :  { %1958 = vmatpush.bf16.msrb.mxu3 %v4216_v22  ;;  %v3884_v8 = vor.u32 %v4866_v63, %v3883_v62  ;;  %v3725_v22 = vld [vmem:[%s7239_s4 + $0x18] sm:$0xf0]  ;;  %v4906_v62 = vld [vmem:[%s7239_s4 + $0x294] sm:$0xf0] }
  0xd7   :  { %v6390_v14 = vpack.c.bf16 %v1075_v5, %v1071_v61  ;;  %v4828_v5 = vld [vmem:[%s7239_s4 + $0x2c] sm:$0xf]  ;;  %v3728_v35 = vor.u32 %v4824_v19, %v3725_v22  ;;  %v3888_v19 = vor.u32 %v4864_v10, %v3885_v11  ;;  %v3869_v22 = vld [vmem:[%s7239_s4 + $0x138] sm:$0xf0] }
  0xd8   :  { %1977 = vmatpush.bf16.msra.mxu0 %v3756_v37  ;;  %v4181_v37 = vld [vmem:[%s7239_s4 + $0x3b0] sm:$0xf0]  ;;  %v4896_v10 = vld [vmem:[%s7239_s4 + $0x24c] sm:$0xf]  ;;  %v4013_v11 = vld [vmem:[%s7239_s4 + $0x258] sm:$0xf0] }
  0xd9   :  { %1882 = vmatmul.bf16.vlgmr.msra.gmra.mxu1 %v6390_v14  ;;  %v4184_v40 = vor.u32 %v4939_v36, %v4181_v37  ;;  %v4091_v36 = vld [vmem:[%s7239_s4 + $0x2e8] sm:$0xf]  ;;  %v4918_v37 = vld [vmem:[%s7239_s4 + $0x2f4] sm:$0xf0] }
  0xda   :  { %1986 = vmatpush.bf16.msra.mxu1 %v3964_v9  ;;  %1959 = vmatpush.bf16.msrb.mxu3 %v4200_v29  ;;  %v3741_v9 = vld [vmem:[%s7239_s4 + $0x38] sm:$0xf0]  ;;  %v4884_v29 = vld [vmem:[%s7239_s4 + $0x1ec] sm:$0xf]  ;;  %v4092_v59 = vor.u32 %v4918_v37, %v4091_v36  ;;  %v3979_v36 = vld [vmem:[%s7239_s4 + $0x208] sm:$0xf] }
  0xdb   :  { %v3744_v18 = vor.u32 %v4828_v5, %v3741_v9  ;;  %v4027_v5 = vld [vmem:[%s7239_s4 + $0x268] sm:$0xf]  ;;  %v4890_v37 = vld [vmem:[%s7239_s4 + $0x214] sm:$0xf0] }
  0xdc   :  { %1978 = vmatpush.bf16.msra.mxu0 %v3740_v46  ;;  %v4165_v46 = vld [vmem:[%s7239_s4 + $0x390] sm:$0xf0] }
  0xdd   :  { %v4168_v49 = vor.u32 %v4935_v45, %v4165_v46  ;;  %v4914_v45 = vld [vmem:[%s7239_s4 + $0x2d4] sm:$0xf0] }
  0xde   :  { %1987 = vmatpush.bf16.msra.mxu1 %v3948_v23  ;;  %1960 = vmatpush.bf16.msrb.mxu3 %v4184_v40  ;;  %v4923_v23 = vld [vmem:[%s7239_s4 + $0x324] sm:$0xf]  ;;  %v4101_v40 = vld [vmem:[%s7239_s4 + $0x310] sm:$0xf0]  ;;  %v4076_v48 = vor.u32 %v4914_v45, %v4075_v0 }
  0xdf   :  { %v4104_v46 = vor.u32 %v4919_v39, %v4101_v40  ;;  %v4916_v39 = vld [vmem:[%s7239_s4 + $0x2ec] sm:$0xf]  ;;  %v4093_v40 = vld [vmem:[%s7239_s4 + $0x2f8] sm:$0xf0] }
  0xe0   :  { %1979 = vmatpush.bf16.msra.mxu0 %v3724_v3  ;;  %v967_v41 = vpop.f32.mrf.mxu0 }
  0xe1   :  { %v968_v44 = vadd.f32 %v967_v41, %v180_v30  ;;  %v981_v55 = vpop.f32.mrf.mxu1 }
  0xe2   :  { %1988 = vmatpush.bf16.msra.mxu1 %v3932_v34  ;;  %1961 = vmatpush.bf16.msrb.mxu3 %v4168_v49  ;;  %v4876_v49 = vld [vmem:[%s7239_s4 + $0x1ac] sm:$0xf] }
  0xe3   :  { %1980 = vmatmul.bf16.vlgmr.msra.gmra.mxu0 %v6232_v43  ;;  %v982_v50 = vadd.f32 %v981_v55, %v968_v44  ;;  %v4880_v44 = vld [vmem:[%s7239_s4 + $0x1cc] sm:$0xf]  ;;  %v3949_v55 = vld [vmem:[%s7239_s4 + $0x1d8] sm:$0xf0] }
  0xe4   :  { %2028 = vmatpush.bf16.msrb.mxu0 %v3840_v6  ;;  %v3952_v47 = vor.u32 %v4880_v44, %v3949_v55  ;;  %v4950_v44 = vld [vmem:[%s7239_s4 + $0x3f4] sm:$0xf0]  ;;  %v3980_v55 = vor.u32 %v4890_v37, %v3979_v36  ;;  %v4940_v36 = vld [vmem:[%s7239_s4 + $0x3ac] sm:$0xf]  ;;  %v4189_v37 = vld [vmem:[%s7239_s4 + $0x3b8] sm:$0xf0] }
  0xe6   :  { %1989 = vmatpush.bf16.msra.mxu1 %v3916_v60  ;;  %1962 = vmatpush.bf16.msrb.mxu3 %v4152_v1 }
  0xe8   :  { %2029 = vmatpush.bf16.msrb.mxu0 %v3824_v20  ;;  %v995_v53 = vpop.f32.mrf.mxu2  ;;  %v969_v3 = vpop.f32.mrf.mxu0 }
  0xe9   :  { %v1009_v61 = vpop.f32.mrf.mxu3  ;;  %v996_v2 = vadd.f32 %v995_v53, %v982_v50  ;;  %1938 = vmatmul.bf16.vlgmr.msrb.gmra.mxu1 %v6390_v14  ;;  %v970_v6 = vadd.f32 %v969_v3, %v180_v30  ;;  %v983_v7 = vpop.f32.mrf.mxu1  ;;  %v3965_v30 = vld [vmem:[%s7239_s4 + $0x1f8] sm:$0xf0]  ;;  %v4868_v3 = vld [vmem:[%s7239_s4 + $0x16c] sm:$0xf] }
  0xea   :  { %1990 = vmatpush.bf16.msra.mxu1 %v3900_v54  ;;  %1963 = vmatpush.bf16.msrb.mxu3 %v4136_v16  ;;  %v3933_v50 = vld [vmem:[%s7239_s4 + $0x1b8] sm:$0xf0]  ;;  %v4872_v54 = vld [vmem:[%s7239_s4 + $0x18c] sm:$0xf]  ;;  %v4011_v16 = vld [vmem:[%s7239_s4 + $0x248] sm:$0xf] }
  0xeb   :  { %v984_v15 = vadd.f32 %v983_v7, %v970_v6  ;;  %v1010_v17 = vadd.f32 %v1009_v61, %v996_v2  ;;  %v4043_v61 = vld [vmem:[%s7239_s4 + $0x288] sm:$0xf]  ;;  %v3920_v63 = vor.u32 %v4872_v54, %v3917_v56  ;;  %v4902_v6 = vld [vmem:[%s7239_s4 + $0x274] sm:$0xf0]  ;;  %v3904_v7 = vor.u32 %v4868_v3, %v3901_v31  ;;  %v4908_v54 = vld [vmem:[%s7239_s4 + $0x2ac] sm:$0xf] }
  0xec   :  { %2030 = vmatpush.bf16.msrb.mxu0 %v3808_v32  ;;  %v4120_v32 = vor.u32 %v4923_v23, %v4117_v24  ;;  %v4044_v2 = vor.u32 %v4906_v62, %v4043_v61  ;;  %v4028_v9 = vor.u32 %v4902_v6, %v4027_v5  ;;  %v3995_v24 = vld [vmem:[%s7239_s4 + $0x228] sm:$0xf]  ;;  %v4061_v56 = vld [vmem:[%s7239_s4 + $0x2b8] sm:$0xf0]  ;;  %v4904_v62 = vld [vmem:[%s7239_s4 + $0x28c] sm:$0xf] }
  0xed   :  { %v1072_v33 = vmax.f32 %v1010_v17, 0.0  ;;  %v4898_v17 = vld [vmem:[%s7239_s4 + $0x254] sm:$0xf0]  ;;  %v4029_v5 = vld [vmem:[%s7239_s4 + $0x278] sm:$0xf0] }
  0xee   :  { %1991 = vmatpush.bf16.msra.mxu1 %v3884_v8  ;;  %1964 = vmatpush.bf16.msrb.mxu3 %v4120_v32  ;;  %v4856_v32 = vld [vmem:[%s7239_s4 + $0x10c] sm:$0xf]  ;;  %v4155_v6 = vld [vmem:[%s7239_s4 + $0x368] sm:$0xf] }
  0xf0   :  { %2031 = vmatpush.bf16.msrb.mxu0 %v3792_v42  ;;  %v997_v20 = vpop.f32.mrf.mxu2  ;;  %v3968_v42 = vor.u32 %v4884_v29, %v3965_v30 }
  0xf1   :  { %v998_v25 = vadd.f32 %v997_v20, %v984_v15  ;;  %v1011_v26 = vpop.f32.mrf.mxu3  ;;  %v4012_v20 = vor.u32 %v4898_v17, %v4011_v16  ;;  %v4892_v17 = vld [vmem:[%s7239_s4 + $0x22c] sm:$0xf] }
  0xf2   :  { %1992 = vmatpush.bf16.msra.mxu1 %v3868_v21  ;;  %1965 = vmatpush.bf16.msrb.mxu3 %v4104_v46  ;;  %v4860_v21 = vld [vmem:[%s7239_s4 + $0x12c] sm:$0xf]  ;;  %v4096_v46 = vor.u32 %v4916_v39, %v4093_v40 }
  0xf3   :  { %v1012_v34 = vadd.f32 %v1011_v26, %v998_v25  ;;  %v4894_v25 = vld [vmem:[%s7239_s4 + $0x234] sm:$0xf0]  ;;  %v3872_v28 = vor.u32 %v4860_v21, %v3869_v22  ;;  %v4936_v39 = vld [vmem:[%s7239_s4 + $0x38c] sm:$0xf] }
  0xf4   :  { %2032 = vmatpush.bf16.msrb.mxu0 %v3776_v51  ;;  %v4059_v51 = vld [vmem:[%s7239_s4 + $0x2a8] sm:$0xf]  ;;  %v3996_v30 = vor.u32 %v4894_v25, %v3995_v24  ;;  %v3981_v24 = vld [vmem:[%s7239_s4 + $0x218] sm:$0xf0] }
  0xf5   :  { %v1076_v41 = vmax.f32 %v1012_v34, 0.0  ;;  %v4060_v53 = vor.u32 %v4910_v52, %v4059_v51  ;;  %v4203_v51 = vld [vmem:[%s7239_s4 + $0x3c8] sm:$0xf]  ;;  %v4946_v52 = vld [vmem:[%s7239_s4 + $0x3d4] sm:$0xf0] }
  0xf6   :  { %1993 = vmatpush.bf16.msra.mxu1 %v3852_v38  ;;  %v4107_v25 = vld [vmem:[%s7239_s4 + $0x308] sm:$0xf] }
  0xf7   :  { %v6540_v60 = vpack.c.bf16 %v1076_v41, %v1072_v33  ;;  %v3853_v33 = vld [vmem:[%s7239_s4 + $0x118] sm:$0xf0] }
  0xf8   :  { %2033 = vmatpush.bf16.msrb.mxu0 %v3760_v4 }
  0xf9   :  { %1896 = vmatmul.bf16.vlgmr.msra.gmra.mxu2 %v6540_v60  ;;  %1994 = vmatmul.bf16.vlgmr.msra.gmra.mxu1 %v6390_v14 }
  0xfa   :  { %2042 = vmatpush.bf16.msrb.mxu1 %v3968_v42  ;;  %2000 = vmatpush.bf16.msra.mxu2 %v4092_v59  ;;  %v3856_v42 = vor.u32 %v4856_v32, %v3853_v33  ;;  %v4219_v59 = vld [vmem:[%s7239_s4 + $0x3e8] sm:$0xf]  ;;  %v4944_v33 = vld [vmem:[%s7239_s4 + $0x3cc] sm:$0xf] }
  0xfc   :  { %2034 = vmatpush.bf16.msrb.mxu0 %v3744_v18 }
  0xfe   :  { %2043 = vmatpush.bf16.msrb.mxu1 %v3952_v47  ;;  %2001 = vmatpush.bf16.msra.mxu2 %v4076_v48  ;;  %v4220_v47 = vor.u32 %v4950_v44, %v4219_v59  ;;  %v4912_v48 = vld [vmem:[%s7239_s4 + $0x2cc] sm:$0xf] }
  0xff   :  { %v4928_v44 = vld [vmem:[%s7239_s4 + $0x34c] sm:$0xf] }
 0x100   :  { %2035 = vmatpush.bf16.msrb.mxu0 %v3728_v35  ;;  %v1023_v58 = vpop.f32.mrf.mxu0 }
 0x101   :  { %v1037_v1 = vpop.f32.mrf.mxu1  ;;  %v1024_v4 = vadd.f32 %v1023_v58, %v181_v57  ;;  %v4942_v58 = vld [vmem:[%s7239_s4 + $0x3b4] sm:$0xf0] }
 0x102   :  { %2002 = vmatpush.bf16.msra.mxu2 %v4060_v53  ;;  %v4204_v53 = vor.u32 %v4946_v52, %v4203_v51  ;;  %v4958_v52 = vld [vmem:[%s7241_s6 + $0x38] sm:$0xff] }
 0x103   :  { %2036 = vmatmul.bf16.vlgmr.msrb.gmra.mxu0 %v6232_v43  ;;  %v3936_v43 = vor.u32 %v4876_v49, %v3933_v50  ;;  %v1038_v12 = vadd.f32 %v1037_v1, %v1024_v4  ;;  %v4077_v49 = vld [vmem:[%s7239_s4 + $0x2d8] sm:$0xf0]  ;;  %v4171_v1 = vld [vmem:[%s7239_s4 + $0x388] sm:$0xf]  ;;  %v4900_v4 = vld [vmem:[%s7239_s4 + $0x26c] sm:$0xf] }
 0x104   :  { %2352 = vmatpush.bf16.msra.mxu0 %v4958_v52 }
 0x105   :  { %2044 = vmatpush.bf16.msrb.mxu1 %v3936_v43  ;;  %v4080_v43 = vor.u32 %v4912_v48, %v4077_v49  ;;  %v4920_v48 = vld [vmem:[%s7239_s4 + $0x30c] sm:$0xf]  ;;  %v4109_v49 = vld [vmem:[%s7239_s4 + $0x318] sm:$0xf0] }
 0x106   :  { %2003 = vmatpush.bf16.msra.mxu2 %v4044_v2  ;;  %v4938_v2 = vld [vmem:[%s7239_s4 + $0x394] sm:$0xf0]  ;;  %v4112_v51 = vor.u32 %v4920_v48, %v4109_v49  ;;  %v4980_v49 = vld [vmem:[%s7241_s6 + $0xe8] sm:$0xff] }
 0x107   :  { %v4172_v31 = vor.u32 %v4938_v2, %v4171_v1  ;;  %v4951_v1 = vld [vmem:[%s7241_s6] sm:$0xff] }
 0x108   :  { %v1051_v8 = vpop.f32.mrf.mxu2  ;;  %v1025_v15 = vpop.f32.mrf.mxu0  ;;  %v4963_v2 = vld [vmem:[%s7241_s6 + $0x60] sm:$0xff] }
 0x109   :  { %2045 = vmatpush.bf16.msrb.mxu1 %v3920_v63  ;;  %v1065_v13 = vpop.f32.mrf.mxu3  ;;  %v1026_v18 = vadd.f32 %v1025_v15, %v181_v57  ;;  %1952 = vmatmul.bf16.vlgmr.msrb.gmra.mxu2 %v6540_v60  ;;  %v1052_v23 = vadd.f32 %v1051_v8, %v1038_v12  ;;  %v1039_v26 = vpop.f32.mrf.mxu1  ;;  %v4187_v57 = vld [vmem:[%s7239_s4 + $0x3a8] sm:$0xf]  ;;  %v4045_v63 = vld [vmem:[%s7239_s4 + $0x298] sm:$0xf0]  ;;  %v4032_v8 = vor.u32 %v4900_v4, %v4029_v5 }
 0x10a   :  { %2004 = vmatpush.bf16.msra.mxu2 %v4028_v9  ;;  %v4188_v61 = vor.u32 %v4942_v58, %v4187_v57  ;;  %v4048_v3 = vor.u32 %v4904_v62, %v4045_v63  ;;  %v4139_v12 = vld [vmem:[%s7239_s4 + $0x348] sm:$0xf]  ;;  %v4016_v15 = vor.u32 %v4896_v10, %v4013_v11  ;;  %v4953_v57 = vld [vmem:[%s7241_s6 + $0x10] sm:$0xff]  ;;  %v4974_v4 = vld [vmem:[%s7241_s6 + $0xb8] sm:$0xff] }
 0x10b   :  { %v1040_v27 = vadd.f32 %v1039_v26, %v1026_v18  ;;  %v1066_v34 = vadd.f32 %v1065_v13, %v1052_v23  ;;  %v4930_v13 = vld [vmem:[%s7239_s4 + $0x354] sm:$0xf0]  ;;  %v3997_v18 = vld [vmem:[%s7239_s4 + $0x238] sm:$0xf0]  ;;  %v4888_v23 = vld [vmem:[%s7239_s4 + $0x20c] sm:$0xf] }
 0x10c   :  { %v4140_v16 = vor.u32 %v4930_v13, %v4139_v12  ;;  %v4000_v21 = vor.u32 %v4892_v17, %v3997_v18  ;;  %v4922_v26 = vld [vmem:[%s7239_s4 + $0x314] sm:$0xf0]  ;;  %v4965_v58 = vld [vmem:[%s7241_s6 + $0x70] sm:$0xff]  ;;  %v4960_v10 = vld [vmem:[%s7241_s6 + $0x48] sm:$0xff] }
 0x10d   :  { %2046 = vmatpush.bf16.msrb.mxu1 %v3904_v7  ;;  %v1073_v0 = vmax.f32 %v1066_v34, 0.0  ;;  %v4934_v7 = vld [vmem:[%s7239_s4 + $0x374] sm:$0xf0]  ;;  %v4205_v34 = vld [vmem:[%s7239_s4 + $0x3d8] sm:$0xf0]  ;;  %v4972_v11 = vld [vmem:[%s7241_s6 + $0xa8] sm:$0xff] }
 0x10e   :  { %2005 = vmatpush.bf16.msra.mxu2 %v4012_v20  ;;  %v4156_v9 = vor.u32 %v4934_v7, %v4155_v6  ;;  %v4926_v20 = vld [vmem:[%s7239_s4 + $0x334] sm:$0xf0]  ;;  %v4961_v6 = vld [vmem:[%s7241_s6 + $0x50] sm:$0xff]  ;;  %v4959_v17 = vld [vmem:[%s7241_s6 + $0x40] sm:$0xff] }
 0x10f   :  { %v4973_v7 = vld [vmem:[%s7241_s6 + $0xb0] sm:$0xff]  ;;  %v4971_v18 = vld [vmem:[%s7241_s6 + $0xa0] sm:$0xff] }
 0x110   :  { %v1053_v29 = vpop.f32.mrf.mxu2 }
 0x111   :  { %2047 = vmatpush.bf16.msrb.mxu1 %v3888_v19  ;;  %v1054_v35 = vadd.f32 %v1053_v29, %v1040_v27  ;;  %v1067_v38 = vpop.f32.mrf.mxu3  ;;  %v4123_v19 = vld [vmem:[%s7239_s4 + $0x328] sm:$0xf]  ;;  %v4948_v27 = vld [vmem:[%s7239_s4 + $0x3ec] sm:$0xf]  ;;  %v3984_v29 = vor.u32 %v4888_v23, %v3981_v24  ;;  %v4970_v24 = vld [vmem:[%s7241_s6 + $0x98] sm:$0xff] }
 0x112   :  { %2006 = vmatpush.bf16.msra.mxu2 %v3996_v30  ;;  %v4124_v22 = vor.u32 %v4926_v20, %v4123_v19  ;;  %v4108_v30 = vor.u32 %v4922_v26, %v4107_v25 }
 0x113   :  { %v1068_v41 = vadd.f32 %v1067_v38, %v1054_v35  ;;  %v4208_v35 = vor.u32 %v4944_v33, %v4205_v34  ;;  %v4192_v38 = vor.u32 %v4940_v36, %v4189_v37  ;;  %v4968_v33 = vld [vmem:[%s7241_s6 + $0x88] sm:$0xff]  ;;  %v4982_v34 = vld [vmem:[%s7241_s6 + $0xf8] sm:$0xff] }
 0x115   :  { %2048 = vmatpush.bf16.msrb.mxu1 %v3872_v28  ;;  %v1077_v45 = vmax.f32 %v1068_v41, 0.0  ;;  %v4221_v28 = vld [vmem:[%s7239_s4 + $0x3f8] sm:$0xf0]  ;;  %v4932_v41 = vld [vmem:[%s7239_s4 + $0x36c] sm:$0xf] }
 0x116   :  { %2007 = vmatpush.bf16.msra.mxu2 %v3980_v55  ;;  %v4224_v32 = vor.u32 %v4948_v27, %v4221_v28  ;;  %v4141_v55 = vld [vmem:[%s7239_s4 + $0x358] sm:$0xf0] }
 0x117   :  { %v6643_v50 = vpack.c.bf16 %v1077_v45, %v1073_v0  ;;  %v4144_v0 = vor.u32 %v4928_v44, %v4141_v55  ;;  %v4924_v45 = vld [vmem:[%s7239_s4 + $0x32c] sm:$0xf] }
 0x119   :  { %2049 = vmatpush.bf16.msrb.mxu1 %v3856_v42  ;;  %1910 = vmatmul.bf16.vlgmr.msra.gmra.mxu3 %v6643_v50  ;;  %v4157_v42 = vld [vmem:[%s7239_s4 + $0x378] sm:$0xf0] }
 0x11a   :  { %2056 = vmatpush.bf16.msrb.mxu2 %v4096_v46  ;;  %2014 = vmatpush.bf16.msra.mxu3 %v4220_v47  ;;  %v4160_v59 = vor.u32 %v4932_v41, %v4157_v42  ;;  %v4125_v46 = vld [vmem:[%s7239_s4 + $0x338] sm:$0xf0] }
 0x11b   :  { %2008 = vmatmul.bf16.vlgmr.msra.gmra.mxu2 %v6540_v60  ;;  %v4128_v47 = vor.u32 %v4924_v45, %v4125_v46  ;;  %v4981_v45 = vld [vmem:[%s7241_s6 + $0xf0] sm:$0xff] }
 0x11c   :  { %2050 = vmatmul.bf16.vlgmr.msrb.gmra.mxu1 %v6390_v14  ;;  %v4064_v14 = vor.u32 %v4908_v54, %v4061_v56  ;;  %v4955_v54 = vld [vmem:[%s7241_s6 + $0x20] sm:$0xff]  ;;  %v4966_v56 = vld [vmem:[%s7241_s6 + $0x78] sm:$0xff] }
 0x11d   :  { %2366 = vmatpush.bf16.msra.mxu1 %v4966_v56  ;;  %v4979_v56 = vld [vmem:[%s7241_s6 + $0xe0] sm:$0xff] }
 0x11e   :  { %2057 = vmatpush.bf16.msrb.mxu2 %v4080_v43  ;;  %2015 = vmatpush.bf16.msra.mxu3 %v4204_v53  ;;  %v4957_v43 = vld [vmem:[%s7241_s6 + $0x30] sm:$0xff]  ;;  %v4956_v53 = vld [vmem:[%s7241_s6 + $0x28] sm:$0xff] }
 0x11f   :  { %2353 = vmatpush.bf16.msra.mxu0 %v4957_v43 }
 0x121   :  { %2367 = vmatpush.bf16.msra.mxu1 %v4965_v58 }
 0x122   :  { %2058 = vmatpush.bf16.msrb.mxu2 %v4064_v14  ;;  %2016 = vmatpush.bf16.msra.mxu3 %v4188_v61  ;;  %v4952_v14 = vld [vmem:[%s7241_s6 + $0x8] sm:$0xff] }
 0x123   :  { %2354 = vmatpush.bf16.msra.mxu0 %v4956_v53  ;;  %v4964_v61 = vld [vmem:[%s7241_s6 + $0x68] sm:$0xff] }
 0x125   :  { %2368 = vmatpush.bf16.msra.mxu1 %v4964_v61 }
 0x126   :  { %2059 = vmatpush.bf16.msrb.mxu2 %v4048_v3  ;;  %2017 = vmatpush.bf16.msra.mxu3 %v4172_v31  ;;  %v4962_v31 = vld [vmem:[%s7241_s6 + $0x58] sm:$0xff] }
 0x127   :  { %2355 = vmatpush.bf16.msra.mxu0 %v4955_v54 }
 0x129   :  { %1966 = vmatmul.bf16.vlgmr.msrb.gmra.mxu3 %v6643_v50  ;;  %2369 = vmatpush.bf16.msra.mxu1 %v4963_v2 }
 0x12a   :  { %2060 = vmatpush.bf16.msrb.mxu2 %v4032_v8  ;;  %2018 = vmatpush.bf16.msra.mxu3 %v4156_v9  ;;  %v6829_v8 = vld [vmem:[%s7242_s5] sm:$0xf] }
 0x12b   :  { %v1212_v12 = vperm.slane %v6829_v8, 0 }
 0x12d   :  { %2370 = vmatpush.bf16.msra.mxu1 %v4962_v31 }
 0x12e   :  { %2061 = vmatpush.bf16.msrb.mxu2 %v4016_v15  ;;  %2019 = vmatpush.bf16.msra.mxu3 %v4140_v16 }
 0x131   :  { %2371 = vmatpush.bf16.msra.mxu1 %v4961_v6  ;;  %v4977_v6 = vld [vmem:[%s7241_s6 + $0xd0] sm:$0xff] }
 0x132   :  { %2062 = vmatpush.bf16.msrb.mxu2 %v4000_v21  ;;  %2020 = vmatpush.bf16.msra.mxu3 %v4124_v22 }
 0x135   :  { %2372 = vmatpush.bf16.msra.mxu1 %v4960_v10 }
 0x136   :  { %2063 = vmatpush.bf16.msrb.mxu2 %v3984_v29  ;;  %2021 = vmatpush.bf16.msra.mxu3 %v4108_v30  ;;  %v4969_v30 = vld [vmem:[%s7241_s6 + $0x90] sm:$0xff] }
 0x137   :  { %v1869_v62 = vpop.f32.mrf.mxu0 }
 0x138   :  { %v1870_v15 = vadd.f32 %v1869_v62, %v1212_v12  ;;  %v4978_v62 = vld [vmem:[%s7241_s6 + $0xd8] sm:$0xff] }
 0x139   :  { %2064 = vmatmul.bf16.vlgmr.msrb.gmra.mxu2 %v6540_v60  ;;  %2022 = vmatmul.bf16.vlgmr.msra.gmra.mxu3 %v6643_v50  ;;  %v4173_v60 = vld [vmem:[%s7239_s4 + $0x398] sm:$0xf0] }
 0x13a   :  { %2070 = vmatpush.bf16.msrb.mxu3 %v4224_v32  ;;  %v4176_v40 = vor.u32 %v4936_v39, %v4173_v60  ;;  %2380 = vmatpush.bf16.msra.mxu2 %v4974_v4 }
 0x13b   :  { %2373 = vmatpush.bf16.msra.mxu1 %v4959_v17 }
 0x13e   :  { %2071 = vmatpush.bf16.msrb.mxu3 %v4208_v35  ;;  %2381 = vmatpush.bf16.msra.mxu2 %v4973_v7  ;;  %v1213_v35 = vperm.slane %v6829_v8, 1 }
 0x13f   :  { %v1871_v5 = vpop.f32.mrf.mxu0 }
 0x140   :  { %v1872_v21 = vadd.f32 %v1871_v5, %v1212_v12  ;;  %v4976_v12 = vld [vmem:[%s7241_s6 + $0xc8] sm:$0xff] }
 0x142   :  { %2072 = vmatpush.bf16.msrb.mxu3 %v4192_v38  ;;  %2382 = vmatpush.bf16.msra.mxu2 %v4972_v11  ;;  %v4967_v38 = vld [vmem:[%s7241_s6 + $0x80] sm:$0xff] }
 0x146   :  { %2073 = vmatpush.bf16.msrb.mxu3 %v4176_v40  ;;  %2383 = vmatpush.bf16.msra.mxu2 %v4971_v18 }
 0x147   :  { %v1925_v19 = vpop.f32.mrf.mxu0 }
 0x148   :  { %v1926_v60 = vadd.f32 %v1925_v19, %v1213_v35 }
 0x14a   :  { %2074 = vmatpush.bf16.msrb.mxu3 %v4160_v59  ;;  %2384 = vmatpush.bf16.msra.mxu2 %v4970_v24 }
 0x14e   :  { %2075 = vmatpush.bf16.msrb.mxu3 %v4144_v0  ;;  %2385 = vmatpush.bf16.msra.mxu2 %v4969_v30 }
 0x14f   :  { %v1927_v36 = vpop.f32.mrf.mxu0 }
 0x150   :  { %v1928_v55 = vadd.f32 %v1927_v36, %v1213_v35 }
 0x152   :  { %2076 = vmatpush.bf16.msrb.mxu3 %v4128_v47  ;;  %2386 = vmatpush.bf16.msra.mxu2 %v4968_v33 }
 0x156   :  { %2077 = vmatpush.bf16.msrb.mxu3 %v4112_v51  ;;  %v1883_v63 = vpop.f32.mrf.mxu1  ;;  %2387 = vmatpush.bf16.msra.mxu2 %v4967_v38 }
 0x157   :  { %v1884_v20 = vadd.f32 %v1883_v63, %v1870_v15  ;;  %v4975_v15 = vld [vmem:[%s7241_s6 + $0xc0] sm:$0xff] }
 0x159   :  { %2078 = vmatmul.bf16.vlgmr.msrb.gmra.mxu3 %v6643_v50  ;;  %v4954_v50 = vld [vmem:[%s7241_s6 + $0x18] sm:$0xff] }
 0x15a   :  { %2356 = vmatpush.bf16.msra.mxu0 %v4954_v50  ;;  %2394 = vmatpush.bf16.msra.mxu3 %v4982_v34  ;;  %v1214_v50 = vperm.slane %v6829_v8, 2 }
 0x15e   :  { %2357 = vmatpush.bf16.msra.mxu0 %v4953_v57  ;;  %v1885_v9 = vpop.f32.mrf.mxu1  ;;  %2395 = vmatpush.bf16.msra.mxu3 %v4981_v45 }
 0x15f   :  { %v1886_v25 = vadd.f32 %v1885_v9, %v1872_v21 }
 0x160   :  { %v1981_v47 = vpop.f32.mrf.mxu0 }
 0x161   :  { %v1982_v58 = vadd.f32 %v1981_v47, %v1214_v50  ;;  %v4995_v47 = vld [vmem:[%s7243_s7 + $0x60] sm:$0xff] }
 0x162   :  { %2358 = vmatpush.bf16.msra.mxu0 %v4952_v14  ;;  %2396 = vmatpush.bf16.msra.mxu3 %v4980_v49 }
 0x166   :  { %2359 = vmatpush.bf16.msra.mxu0 %v4951_v1  ;;  %v1939_v22 = vpop.f32.mrf.mxu1  ;;  %2397 = vmatpush.bf16.msra.mxu3 %v4979_v56 }
 0x167   :  { %v1940_v59 = vadd.f32 %v1939_v22, %v1926_v60  ;;  %v1215_v22 = vperm.slane %v6829_v8, 3  ;;  %v4990_v8 = vld [vmem:[%s7243_s7 + $0x38] sm:$0xff] }
 0x168   :  { %v1983_v14 = vpop.f32.mrf.mxu0  ;;  %v4998_v60 = vld [vmem:[%s7243_s7 + $0x78] sm:$0xff]  ;;  %2584 = vmatpush.bf16.msrb.mxu2 %v4990_v8 }
 0x169   :  { %v1984_v31 = vadd.f32 %v1983_v14, %v1214_v50  ;;  %2523 = vmatpush.bf16.msrb.mxu1 %v4998_v60  ;;  %v4527_v8 = vld [vmem:[%s7245_s9 + $0xb8] sm:$0xf0] }
 0x16a   :  { %2398 = vmatpush.bf16.msra.mxu3 %v4978_v62  ;;  %v2408_v62 = vld [vmem:[%s7244_s1] sm:$0xff] }
 0x16e   :  { %v1941_v37 = vpop.f32.mrf.mxu1  ;;  %2399 = vmatpush.bf16.msra.mxu3 %v4977_v6  ;;  %v5029_v6 = vld [vmem:[%s7245_s9 + $0xec] sm:$0xf0] }
 0x16f   :  { %v1942_v46 = vadd.f32 %v1941_v37, %v1928_v55  ;;  %v4988_v55 = vld [vmem:[%s7243_s7 + $0x28] sm:$0xff] }
 0x172   :  { %2400 = vmatpush.bf16.msra.mxu3 %v4976_v12  ;;  %v5030_v12 = vld [vmem:[%s7245_s9 + $0xf4] sm:$0xf0] }
 0x176   :  { %v1995_v52 = vpop.f32.mrf.mxu1  ;;  %2401 = vmatpush.bf16.msra.mxu3 %v4975_v15 }
 0x177   :  { %v1996_v1 = vadd.f32 %v1995_v52, %v1982_v58  ;;  %v4986_v52 = vld [vmem:[%s7243_s7 + $0x18] sm:$0xff] }
 0x17c   :  { %v1897_v3 = vpop.f32.mrf.mxu2 }
 0x17d   :  { %v1898_v23 = vadd.f32 %v1897_v3, %v1884_v20 }
 0x17e   :  { %v1997_v2 = vpop.f32.mrf.mxu1 }
 0x17f   :  { %v1998_v7 = vadd.f32 %v1997_v2, %v1984_v31  ;;  %v4993_v2 = vld [vmem:[%s7243_s7 + $0x50] sm:$0xff]  ;;  %v4992_v31 = vld [vmem:[%s7243_s7 + $0x48] sm:$0xff] }
 0x180   :  { %v2037_v19 = vpop.f32.mrf.mxu0 }
 0x184   :  { %v1899_v13 = vpop.f32.mrf.mxu2 }
 0x185   :  { %v1900_v28 = vadd.f32 %v1899_v13, %v1886_v25 }
 0x188   :  { %v2039_v24 = vpop.f32.mrf.mxu0 }
 0x18c   :  { %v1953_v26 = vpop.f32.mrf.mxu2 }
 0x18d   :  { %v1954_v0 = vadd.f32 %v1953_v26, %v1940_v59 }
 0x194   :  { %v1955_v40 = vpop.f32.mrf.mxu2 }
 0x195   :  { %v1956_v51 = vadd.f32 %v1955_v40, %v1942_v46  ;;  %v4987_v46 = vld [vmem:[%s7243_s7 + $0x20] sm:$0xff] }
 0x199   :  { %v2051_v20 = vpop.f32.mrf.mxu1 }
 0x19c   :  { %v1911_v16 = vpop.f32.mrf.mxu3 }
 0x19d   :  { %v1912_v27 = vadd.f32 %v1911_v16, %v1898_v23  ;;  %v2038_v23 = vadd.f32 %v2037_v19, %v1215_v22 }
 0x19e   :  { %v2009_v54 = vpop.f32.mrf.mxu2 }
 0x19f   :  { %5065 = vtanh.f32 %v1912_v27  ;;  %v2010_v4 = vadd.f32 %v2009_v54, %v1996_v1  ;;  %v2052_v26 = vadd.f32 %v2051_v20, %v2038_v23  ;;  %v2409_v1 = vld [vmem:[%s7244_s1 + $0x8] sm:$0xff]  ;;  %v5025_v20 = vld [vmem:[%s7245_s9 + $0xcc] sm:$0xf0] }
 0x1a1   :  { %v2053_v27 = vpop.f32.mrf.mxu1 }
 0x1a4   :  { %v1913_v29 = vpop.f32.mrf.mxu3 }
 0x1a5   :  { %v1914_v32 = vadd.f32 %v1913_v29, %v1900_v28  ;;  %v5066_v39 = vpop.eup %5065  ;;  %v2040_v28 = vadd.f32 %v2039_v24, %v1215_v22  ;;  %v4535_v22 = vld [vmem:[%s7245_s9 + $0xd0] sm:$0xf0] }
 0x1a6   :  { %v2011_v5 = vpop.f32.mrf.mxu2 }
 0x1a7   :  { %5067 = vtanh.f32 %v1914_v32  ;;  %v2012_v10 = vadd.f32 %v2011_v5, %v1998_v7  ;;  %v2054_v32 = vadd.f32 %v2053_v27, %v2040_v28  ;;  %v4549_v5 = vld [vmem:[%s7245_s9 + $0xe0] sm:$0xf]  ;;  %v5027_v7 = vld [vmem:[%s7245_s9 + $0xe4] sm:$0xf]  ;;  %v5024_v27 = vld [vmem:[%s7245_s9 + $0xcc] sm:$0xf] }
 0x1ac   :  { %v1967_v41 = vpop.f32.mrf.mxu3 }
 0x1ad   :  { %v5068_v42 = vpop.eup %5067  ;;  %v1968_v48 = vadd.f32 %v1967_v41, %v1954_v0  ;;  %v4989_v41 = vld [vmem:[%s7243_s7 + $0x30] sm:$0xff]  ;;  %v4996_v0 = vld [vmem:[%s7243_s7 + $0x68] sm:$0xff] }
 0x1ae   :  { %v2092_v44 = vpack.c.bf16 %v5068_v42, %v5066_v39  ;;  %v4997_v42 = vld [vmem:[%s7243_s7 + $0x70] sm:$0xff]  ;;  %2585 = vmatpush.bf16.msrb.mxu2 %v4989_v41  ;;  %v4501_v41 = vld [vmem:[%s7245_s9 + $0x80] sm:$0xf] }
 0x1af   :  { %5069 = vtanh.f32 %v1968_v48  ;;  %2524 = vmatpush.bf16.msrb.mxu1 %v4997_v42  ;;  %v5017_v42 = vld [vmem:[%s7245_s9 + $0x8c] sm:$0xf0] }
 0x1b0   :  { %2360 = vmatmul.bf16.vlgmr.msra.gmra.mxu0 %v2092_v44 }
 0x1b2   :  { %2586 = vmatpush.bf16.msrb.mxu2 %v4988_v55  ;;  %v4503_v55 = vld [vmem:[%s7245_s9 + $0x90] sm:$0xf0] }
 0x1b3   :  { %2525 = vmatpush.bf16.msrb.mxu1 %v4996_v0  ;;  %v4509_v0 = vld [vmem:[%s7245_s9 + $0x88] sm:$0xf] }
 0x1b4   :  { %v1969_v43 = vpop.f32.mrf.mxu3 }
 0x1b5   :  { %v1970_v53 = vadd.f32 %v1969_v43, %v1956_v51  ;;  %v5070_v57 = vpop.eup %5069  ;;  %v4994_v43 = vld [vmem:[%s7243_s7 + $0x58] sm:$0xff] }
 0x1b6   :  { %2587 = vmatpush.bf16.msrb.mxu2 %v4987_v46  ;;  %v5016_v46 = vld [vmem:[%s7245_s9 + $0x8c] sm:$0xf] }
 0x1b7   :  { %5071 = vtanh.f32 %v1970_v53  ;;  %2526 = vmatpush.bf16.msrb.mxu1 %v4995_v47  ;;  %v4511_v47 = vld [vmem:[%s7245_s9 + $0x98] sm:$0xf0] }
 0x1ba   :  { %2588 = vmatpush.bf16.msrb.mxu2 %v4986_v52  ;;  %v4485_v52 = vld [vmem:[%s7245_s9 + $0x60] sm:$0xf] }
 0x1bb   :  { %2527 = vmatpush.bf16.msrb.mxu1 %v4994_v43  ;;  %v5013_v43 = vld [vmem:[%s7245_s9 + $0x6c] sm:$0xf0] }
 0x1bc   :  { %v2023_v61 = vpop.f32.mrf.mxu3  ;;  %v2065_v21 = vpop.f32.mrf.mxu2 }
 0x1bd   :  { %v5072_v63 = vpop.eup %5071  ;;  %v2024_v9 = vadd.f32 %v2023_v61, %v2010_v4  ;;  %v2066_v29 = vadd.f32 %v2065_v21, %v2052_v26  ;;  %v4991_v4 = vld [vmem:[%s7243_s7 + $0x40] sm:$0xff]  ;;  %v5026_v26 = vld [vmem:[%s7245_s9 + $0xd4] sm:$0xf0] }
 0x1be   :  { %v2093_v3 = vpack.c.bf16 %v5072_v63, %v5070_v57  ;;  %v4985_v57 = vld [vmem:[%s7243_s7 + $0x10] sm:$0xff]  ;;  %v4984_v63 = vld [vmem:[%s7243_s7 + $0x8] sm:$0xff]  ;;  %v5023_v21 = vld [vmem:[%s7245_s9 + $0xc4] sm:$0xf] }
 0x1bf   :  { %5073 = vtanh.f32 %v2024_v9  ;;  %2589 = vmatpush.bf16.msrb.mxu2 %v4985_v57  ;;  %2528 = vmatpush.bf16.msrb.mxu1 %v4993_v2  ;;  %v4550_v9 = vor.u32 %v5029_v6, %v4549_v5  ;;  %v4538_v24 = vor.u32 %v5023_v21, %v4535_v22  ;;  %v5014_v57 = vld [vmem:[%s7245_s9 + $0x74] sm:$0xf0]  ;;  %v5009_v2 = vld [vmem:[%s7245_s9 + $0x4c] sm:$0xf0]  ;;  %v5003_v21 = vld [vmem:[%s7245_s9 + $0x24] sm:$0xf] }
 0x1c0   :  { %2374 = vmatmul.bf16.vlgmr.msra.gmra.mxu1 %v2093_v3  ;;  %v4983_v3 = vld [vmem:[%s7243_s7] sm:$0xff] }
 0x1c1   :  { %2806 = vmatpush.bf16.msrb.mxu3 %v4550_v9  ;;  %v5007_v9 = vld [vmem:[%s7245_s9 + $0x44] sm:$0xf] }
 0x1c3   :  { %2590 = vmatpush.bf16.msrb.mxu2 %v4984_v63  ;;  %2529 = vmatpush.bf16.msrb.mxu1 %v4992_v31 }
 0x1c4   :  { %v2025_v11 = vpop.f32.mrf.mxu3  ;;  %v2067_v30 = vpop.f32.mrf.mxu2 }
 0x1c5   :  { %v2026_v13 = vadd.f32 %v2025_v11, %v2012_v10  ;;  %v5074_v16 = vpop.eup %5073  ;;  %v2068_v34 = vadd.f32 %v2067_v30, %v2054_v32  ;;  %v4551_v10 = vld [vmem:[%s7245_s9 + $0xf0] sm:$0xf0]  ;;  %v4557_v11 = vld [vmem:[%s7245_s9 + $0xe8] sm:$0xf]  ;;  %v4517_v30 = vld [vmem:[%s7245_s9 + $0xa0] sm:$0xf] }
 0x1c6   :  { %v4558_v15 = vor.u32 %v5030_v12, %v4557_v11  ;;  %v5021_v32 = vld [vmem:[%s7245_s9 + $0xac] sm:$0xf0]  ;;  %v4477_v11 = vld [vmem:[%s7245_s9 + $0x48] sm:$0xf] }
 0x1c7   :  { %5075 = vtanh.f32 %v2026_v13  ;;  %2591 = vmatpush.bf16.msrb.mxu2 %v4983_v3  ;;  %2530 = vmatpush.bf16.msrb.mxu1 %v4991_v4  ;;  %v4554_v13 = vor.u32 %v5027_v7, %v4551_v10  ;;  %v4471_v10 = vld [vmem:[%s7245_s9 + $0x50] sm:$0xf0] }
 0x1c8   :  { %v4474_v12 = vor.u32 %v5007_v9, %v4471_v10  ;;  %v5040_v9 = vld [vmem:[%s7247_s11 + $0x48] sm:$0xff] }
 0x1c9   :  { %v5048_v10 = vld [vmem:[%s7247_s11 + $0x88] sm:$0xff] }
 0x1cb   :  { %2832 = vmatpush.bf16.msra.mxu1 %v4558_v15  ;;  %v5008_v15 = vld [vmem:[%s7245_s9 + $0x4c] sm:$0xf] }
 0x1cd   :  { %v5076_v17 = vpop.eup %5075 }
 0x1ce   :  { %v2094_v18 = vpack.c.bf16 %v5076_v17, %v5074_v16  ;;  %v5028_v16 = vld [vmem:[%s7245_s9 + $0xec] sm:$0xf]  ;;  %v4559_v17 = vld [vmem:[%s7245_s9 + $0xf8] sm:$0xf0] }
 0x1cf   :  { %v4562_v19 = vor.u32 %v5028_v16, %v4559_v17  ;;  %v4479_v16 = vld [vmem:[%s7245_s9 + $0x58] sm:$0xf0] }
 0x1d0   :  { %2388 = vmatmul.bf16.vlgmr.msra.gmra.mxu2 %v2094_v18  ;;  %v4533_v18 = vld [vmem:[%s7245_s9 + $0xc0] sm:$0xf] }
 0x1d1   :  { %v4534_v23 = vor.u32 %v5025_v20, %v4533_v18  ;;  %2845 = vmatpush.bf16.msra.mxu2 %v4562_v19  ;;  %v4482_v18 = vor.u32 %v5008_v15, %v4479_v16  ;;  %v4453_v19 = vld [vmem:[%s7245_s9 + $0x20] sm:$0xf]  ;;  %v5005_v20 = vld [vmem:[%s7245_s9 + $0x2c] sm:$0xf0]  ;;  %v5032_v16 = vld [vmem:[%s7247_s11 + $0x8] sm:$0xff] }
 0x1d2   :  { %v4454_v22 = vor.u32 %v5005_v20, %v4453_v19  ;;  %v5047_v15 = vld [vmem:[%s7247_s11 + $0x80] sm:$0xff] }
 0x1d3   :  { %2807 = vmatpush.bf16.msrb.mxu3 %v4534_v23  ;;  %v4455_v23 = vld [vmem:[%s7245_s9 + $0x30] sm:$0xf0]  ;;  %v5055_v19 = vld [vmem:[%s7247_s11 + $0xc0] sm:$0xff] }
 0x1d4   :  { %v2636_v20 = vld [vmem:[%s7248_s10] sm:$0xf] }
 0x1dc   :  { %v2079_v25 = vpop.f32.mrf.mxu3 }
 0x1dd   :  { %v2080_v33 = vadd.f32 %v2079_v25, %v2066_v29  ;;  %v4541_v25 = vld [vmem:[%s7245_s9 + $0xc8] sm:$0xf]  ;;  %v4543_v29 = vld [vmem:[%s7245_s9 + $0xd8] sm:$0xf0] }
 0x1de   :  { %v4542_v28 = vor.u32 %v5026_v26, %v4541_v25  ;;  %v5006_v25 = vld [vmem:[%s7245_s9 + $0x34] sm:$0xf0]  ;;  %v4458_v26 = vor.u32 %v5003_v21, %v4455_v23  ;;  %v2639_v21 = vperm.slane %v2636_v20, 1 }
 0x1df   :  { %5077 = vtanh.f32 %v2080_v33  ;;  %v4546_v33 = vor.u32 %v5024_v27, %v4543_v29  ;;  %v4463_v29 = vld [vmem:[%s7245_s9 + $0x38] sm:$0xf0] }
 0x1e0   :  { %2833 = vmatpush.bf16.msra.mxu1 %v4542_v28  ;;  %v5004_v28 = vld [vmem:[%s7245_s9 + $0x2c] sm:$0xf] }
 0x1e1   :  { %2846 = vmatpush.bf16.msra.mxu2 %v4546_v33  ;;  %v5001_v33 = vld [vmem:[%s7245_s9 + $0xc] sm:$0xf0] }
 0x1e4   :  { %v2081_v35 = vpop.f32.mrf.mxu3 }
 0x1e5   :  { %v2082_v36 = vadd.f32 %v2081_v35, %v2068_v34  ;;  %v5078_v37 = vpop.eup %5077  ;;  %v5019_v34 = vld [vmem:[%s7245_s9 + $0xa4] sm:$0xf]  ;;  %v4519_v35 = vld [vmem:[%s7245_s9 + $0xb0] sm:$0xf0] }
 0x1e6   :  { %v4522_v60 = vor.u32 %v5019_v34, %v4519_v35  ;;  %v4999_v34 = vld [vmem:[%s7245_s9 + $0x4] sm:$0xf] }
 0x1e7   :  { %5079 = vtanh.f32 %v2082_v36  ;;  %v4525_v36 = vld [vmem:[%s7245_s9 + $0xa8] sm:$0xf] }
 0x1ed   :  { %v5080_v38 = vpop.eup %5079 }
 0x1ee   :  { %v2095_v39 = vpack.c.bf16 %v5080_v38, %v5078_v37  ;;  %v4518_v37 = vor.u32 %v5021_v32, %v4517_v30  ;;  %v5022_v38 = vld [vmem:[%s7245_s9 + $0xb4] sm:$0xf0]  ;;  %v4466_v30 = vor.u32 %v5004_v28, %v4463_v29  ;;  %v4437_v32 = vld [vmem:[%s7245_s9] sm:$0xf]  ;;  %v2641_v28 = vperm.slane %v2636_v20, 3 }
 0x1ef   :  { %v4438_v35 = vor.u32 %v5001_v33, %v4437_v32 }
 0x1f0   :  { %2402 = vmatmul.bf16.vlgmr.msra.gmra.mxu3 %v2095_v39  ;;  %v5020_v39 = vld [vmem:[%s7245_s9 + $0xac] sm:$0xf] }
 0x1f1   :  { %2808 = vmatpush.bf16.msrb.mxu3 %v4518_v37  ;;  %v4445_v37 = vld [vmem:[%s7245_s9 + $0x8] sm:$0xf] }
 0x22d   :  { %v2361_v59 = vpop.f32.mrf.mxu0 }
 0x235   :  { %v2363_v49 = vpop.f32.mrf.mxu0 }
 0x23d   :  { %v2375_v40 = vpop.f32.mrf.mxu1 }
 0x23e   :  { %v2376_v54 = vadd.f32 %v2375_v40, %v2361_v59  ;;  %v4526_v40 = vor.u32 %v5022_v38, %v4525_v36  ;;  %v5015_v59 = vld [vmem:[%s7245_s9 + $0x84] sm:$0xf]  ;;  %v4439_v36 = vld [vmem:[%s7245_s9 + $0x10] sm:$0xf0]  ;;  %v5002_v38 = vld [vmem:[%s7245_s9 + $0x14] sm:$0xf0] }
 0x240   :  { %2834 = vmatpush.bf16.msra.mxu1 %v4526_v40  ;;  %v4447_v40 = vld [vmem:[%s7245_s9 + $0x18] sm:$0xf0] }
 0x245   :  { %v2377_v48 = vpop.f32.mrf.mxu1 }
 0x246   :  { %v2378_v53 = vadd.f32 %v2377_v48, %v2363_v49  ;;  %v4502_v48 = vor.u32 %v5017_v42, %v4501_v41  ;;  %v4506_v49 = vor.u32 %v5015_v59, %v4503_v55  ;;  %v5046_v42 = vld [vmem:[%s7247_s11 + $0x78] sm:$0xff] }
 0x247   :  { %v5054_v59 = vld [vmem:[%s7247_s11 + $0xb8] sm:$0xff] }
 0x248   :  { %2809 = vmatpush.bf16.msrb.mxu3 %v4502_v48  ;;  %v5062_v55 = vld [vmem:[%s7247_s11 + $0xf8] sm:$0xff]  ;;  %v5044_v48 = vld [vmem:[%s7247_s11 + $0x68] sm:$0xff] }
 0x253   :  { %v2389_v44 = vpop.f32.mrf.mxu2 }
 0x254   :  { %v2390_v58 = vadd.f32 %v2389_v44, %v2376_v54  ;;  %v4530_v44 = vor.u32 %v5020_v39, %v4527_v8  ;;  %v4514_v54 = vor.u32 %v5016_v46, %v4511_v47  ;;  %v4442_v39 = vor.u32 %v4999_v34, %v4439_v36  ;;  %v5037_v46 = vld [vmem:[%s7247_s11 + $0x30] sm:$0xff] }
 0x255   :  { %v4446_v8 = vor.u32 %v5002_v38, %v4445_v37  ;;  %v5061_v47 = vld [vmem:[%s7247_s11 + $0xf0] sm:$0xff] }
 0x256   :  { %2847 = vmatpush.bf16.msra.mxu2 %v4530_v44  ;;  %v5038_v44 = vld [vmem:[%s7247_s11 + $0x38] sm:$0xff] }
 0x25a   :  { %2848 = vmatpush.bf16.msra.mxu2 %v4514_v54  ;;  %v5035_v54 = vld [vmem:[%s7247_s11 + $0x20] sm:$0xff] }
 0x25b   :  { %v2391_v51 = vpop.f32.mrf.mxu2 }
 0x25c   :  { %v2392_v50 = vadd.f32 %v2391_v51, %v2378_v53  ;;  %v5011_v53 = vld [vmem:[%s7245_s9 + $0x64] sm:$0xf] }
 0x273   :  { %v2403_v45 = vpop.f32.mrf.mxu3 }
 0x274   :  { %v2404_v61 = vadd.f32 %v2403_v45, %v2390_v58  ;;  %v5018_v45 = vld [vmem:[%s7245_s9 + $0x94] sm:$0xf0]  ;;  %v5012_v58 = vld [vmem:[%s7245_s9 + $0x6c] sm:$0xf] }
 0x275   :  { %v4510_v51 = vor.u32 %v5018_v45, %v4509_v0  ;;  %v5045_v0 = vld [vmem:[%s7247_s11 + $0x70] sm:$0xff] }
 0x276   :  { %v5053_v45 = vld [vmem:[%s7247_s11 + $0xb0] sm:$0xff] }
 0x277   :  { %2835 = vmatpush.bf16.msra.mxu1 %v4510_v51  ;;  %v5036_v51 = vld [vmem:[%s7247_s11 + $0x28] sm:$0xff] }
 0x27b   :  { %v2405_v56 = vpop.f32.mrf.mxu3 }
 0x27c   :  { %v2406_v14 = vadd.f32 %v2405_v56, %v2392_v50  ;;  %v4487_v50 = vld [vmem:[%s7245_s9 + $0x70] sm:$0xf0]  ;;  %v4493_v56 = vld [vmem:[%s7245_s9 + $0x68] sm:$0xf] }
 0x27d   :  { %v4494_v63 = vor.u32 %v5014_v57, %v4493_v56  ;;  %v5042_v56 = vld [vmem:[%s7247_s11 + $0x58] sm:$0xff] }
 0x27e   :  { %2431 = vmatpush.msrb.mxu0 %v2406_v14  ;;  %v4495_v14 = vld [vmem:[%s7245_s9 + $0x78] sm:$0xf0] }
 0x27f   :  { %v4498_v3 = vor.u32 %v5012_v58, %v4495_v14  ;;  %2836 = vmatpush.bf16.msra.mxu1 %v4494_v63  ;;  %v5050_v57 = vld [vmem:[%s7247_s11 + $0x98] sm:$0xff]  ;;  %v5063_v14 = vld [vmem:[%s7246_s8] ss:$0 sm:$0xff] }
 0x280   :  { %2432 = vmatpush.msrb.mxu0 %v2404_v61  ;;  %v4486_v61 = vor.u32 %v5013_v43, %v4485_v52  ;;  %v5060_v52 = vld [vmem:[%s7247_s11 + $0xe8] sm:$0xff]  ;;  %v5043_v43 = vld [vmem:[%s7247_s11 + $0x60] sm:$0xff] }
 0x281   :  { %4353 = vmatmul.msk.f32.vlgmr.msrb.gmra.mxu0 %vm2410_vm0, %v2408_v62  ;;  %v4490_v62 = vor.u32 %v5011_v53, %v4487_v50  ;;  %2849 = vmatpush.bf16.msra.mxu2 %v4498_v3  ;;  %v5051_v53 = vld [vmem:[%s7247_s11 + $0xa0] sm:$0xff] }
 0x282   :  { %2819 = vmatpush.bf16.msra.mxu0 %v4554_v13  ;;  %2810 = vmatpush.bf16.msrb.mxu3 %v4486_v61  ;;  %v5010_v13 = vld [vmem:[%s7245_s9 + $0x54] sm:$0xf0]  ;;  %v5059_v50 = vld [vmem:[%s7247_s11 + $0xe0] sm:$0xff] }
 0x283   :  { %v4478_v17 = vor.u32 %v5010_v13, %v4477_v11  ;;  %v5033_v11 = vld [vmem:[%s7247_s11 + $0x10] sm:$0xff]  ;;  %v5039_v13 = vld [vmem:[%s7247_s11 + $0x40] sm:$0xff] }
 0x285   :  { %2837 = vmatpush.bf16.msra.mxu1 %v4478_v17  ;;  %2850 = vmatpush.bf16.msra.mxu2 %v4482_v18  ;;  %v5056_v17 = vld [vmem:[%s7247_s11 + $0xc8] sm:$0xff]  ;;  %v5031_v18 = vld [vmem:[%s7247_s11] sm:$0xff] }
 0x286   :  { %2820 = vmatpush.bf16.msra.mxu0 %v4538_v24  ;;  %v4461_v24 = vld [vmem:[%s7245_s9 + $0x28] sm:$0xf] }
 0x287   :  { %v4462_v27 = vor.u32 %v5006_v25, %v4461_v24 }
 0x289   :  { %4354 = vmatmul.msk.f32.gmra.mxu0 %vm2410_vm0, %v2409_v1  ;;  %v4469_v1 = vld [vmem:[%s7245_s9 + $0x40] sm:$0xf]  ;;  %2838 = vmatpush.bf16.msra.mxu1 %v4462_v27  ;;  %v2638_v27 = vperm.slane %v2636_v20, 0 }
 0x28a   :  { %2821 = vmatpush.bf16.msra.mxu0 %v4522_v60  ;;  %v4470_v31 = vor.u32 %v5009_v2, %v4469_v1  ;;  %2851 = vmatpush.bf16.msra.mxu2 %v4466_v30  ;;  %v5000_v60 = vld [vmem:[%s7245_s9 + $0xc] sm:$0xf] }
 0x28b   :  { %v4450_v41 = vor.u32 %v5000_v60, %v4447_v40 }
 0x28c   :  { %2811 = vmatpush.bf16.msrb.mxu3 %v4470_v31 }
 0x28d   :  { %2839 = vmatpush.bf16.msra.mxu1 %v4446_v8 }
 0x28e   :  { %2822 = vmatpush.bf16.msra.mxu0 %v4506_v49  ;;  %2852 = vmatpush.bf16.msra.mxu2 %v4450_v41  ;;  %v5052_v49 = vld [vmem:[%s7247_s11 + $0xa8] sm:$0xff] }
 0x290   :  { %2812 = vmatpush.bf16.msrb.mxu3 %v4454_v22  ;;  %v2640_v22 = vperm.slane %v2636_v20, 2 }
 0x292   :  { %2823 = vmatpush.bf16.msra.mxu0 %v4490_v62 }
 0x294   :  { %2813 = vmatpush.bf16.msrb.mxu3 %v4438_v35 }
 0x296   :  { %2824 = vmatpush.bf16.msra.mxu0 %v4474_v12  ;;  %v5057_v12 = vld [vmem:[%s7247_s11 + $0xd0] sm:$0xff] }
 0x298   :  { %3126 = vmatpush.bf16.msra.mxu3 %v5038_v44 }
 0x29a   :  { %2825 = vmatpush.bf16.msra.mxu0 %v4458_v26 }
 0x29c   :  { %3127 = vmatpush.bf16.msra.mxu3 %v5037_v46  ;;  %v5064_v46 = vld [vmem:[%s7249_s12] ss:$0 sm:$0xff] }
 0x29e   :  { %2826 = vmatpush.bf16.msra.mxu0 %v4442_v39 }
 0x2a0   :  { %3128 = vmatpush.bf16.msra.mxu3 %v5036_v51 }
 0x2a2   :  { %3139 = vmatpush.bf16.msrb.mxu0 %v5046_v42 }
 0x2a4   :  { %3129 = vmatpush.bf16.msra.mxu3 %v5035_v54 }
 0x2a6   :  { %3140 = vmatpush.bf16.msrb.mxu0 %v5045_v0 }
 0x2aa   :  { %3141 = vmatpush.bf16.msrb.mxu0 %v5044_v48 }
 0x2ae   :  { %3142 = vmatpush.bf16.msrb.mxu0 %v5043_v43 }
 0x2b2   :  { %3143 = vmatpush.bf16.msrb.mxu0 %v5042_v56 }
 0x2fe   :  { %v2434_v4 = vpop.f32.mrf.mxu0 }
 0x2ff   :  { %v2440_v5 = vpack.c.bf16 %v2434_v4, %v2434_v4  ;;  %v5041_v4 = vld [vmem:[%s7247_s11 + $0x50] sm:$0xff] }
 0x300   :  { %3144 = vmatpush.bf16.msrb.mxu0 %v5041_v4 }
 0x301   :  { %2592 = vmatmul.bf16.vlgmr.msrb.gmra.mxu2 %v2440_v5  ;;  %v5049_v5 = vld [vmem:[%s7247_s11 + $0x90] sm:$0xff] }
 0x302   :  { %3165 = vmatpush.bf16.msrb.mxu2 %v5062_v55 }
 0x304   :  { %3145 = vmatpush.bf16.msrb.mxu0 %v5040_v9 }
 0x306   :  { %v2437_v6 = vpop.f32.mrf.mxu0  ;;  %3166 = vmatpush.bf16.msrb.mxu2 %v5061_v47 }
 0x307   :  { %v2441_v7 = vpack.c.bf16 %v2437_v6, %v2437_v6  ;;  %v5034_v6 = vld [vmem:[%s7247_s11 + $0x18] sm:$0xff] }
 0x308   :  { %3130 = vmatpush.bf16.msra.mxu3 %v5034_v6  ;;  %3146 = vmatpush.bf16.msrb.mxu0 %v5039_v13 }
 0x309   :  { %2531 = vmatmul.bf16.vlgmr.msrb.gmra.mxu1 %v2441_v7  ;;  %v5058_v7 = vld [vmem:[%s7247_s11 + $0xd8] sm:$0xff] }
 0x30a   :  { %3152 = vmatpush.bf16.msrb.mxu1 %v5054_v59  ;;  %3167 = vmatpush.bf16.msrb.mxu2 %v5060_v52 }
 0x30c   :  { %3131 = vmatpush.bf16.msra.mxu3 %v5033_v11 }
 0x30e   :  { %3153 = vmatpush.bf16.msrb.mxu1 %v5053_v45  ;;  %3168 = vmatpush.bf16.msrb.mxu2 %v5059_v50 }
 0x310   :  { %3132 = vmatpush.bf16.msra.mxu3 %v5032_v16 }
 0x312   :  { %3154 = vmatpush.bf16.msrb.mxu1 %v5052_v49  ;;  %3169 = vmatpush.bf16.msrb.mxu2 %v5058_v7 }
 0x314   :  { %3133 = vmatpush.bf16.msra.mxu3 %v5031_v18 }
 0x316   :  { %3155 = vmatpush.bf16.msrb.mxu1 %v5051_v53  ;;  %3170 = vmatpush.bf16.msrb.mxu2 %v5057_v12 }
 0x31a   :  { %3156 = vmatpush.bf16.msrb.mxu1 %v5050_v57  ;;  %3171 = vmatpush.bf16.msrb.mxu2 %v5056_v17 }
 0x31e   :  { %3157 = vmatpush.bf16.msrb.mxu1 %v5049_v5  ;;  %3172 = vmatpush.bf16.msrb.mxu2 %v5055_v19 }
 0x322   :  { %3158 = vmatpush.bf16.msrb.mxu1 %v5048_v10 }
 0x326   :  { %3159 = vmatpush.bf16.msrb.mxu1 %v5047_v15 }
 0x384   :  { %v2593_v58 = vpop.f32.mrf.mxu2 }
 0x386   :  { %v2532_v61 = vpop.f32.mrf.mxu1 }
 0x387   :  { %v2594_v62 = vadd.f32 %v2593_v58, %v2532_v61 }
 0x389   :  { %v2601_v63 = vadd.f32 %v5063_v14, %v2594_v62 }
 0x38b   :  { %v2602_v1 = vmax.f32 %v2601_v63, 0.0 }
 0x38c   :  { %v2595_v2 = vpop.f32.mrf.mxu2 }
 0x38d   :  { %v2603_v3 = vpack.c.bf16 %v2602_v1, %v2602_v1 }
 0x38e   :  { %v2534_v31 = vpop.f32.mrf.mxu1 }
 0x38f   :  { %2814 = vmatmul.bf16.vlgmr.msrb.gmra.mxu3 %v2603_v3  ;;  %2827 = vmatmul.bf16.vlgmr.msra.gmra.mxu0 %v2603_v3 }
 0x390   :  { %2840 = vmatmul.bf16.vlgmr.msra.gmra.mxu1 %v2603_v3  ;;  %2853 = vmatmul.bf16.vlgmr.msra.gmra.mxu2 %v2603_v3 }
 0x40c   :  { %v2828_v23 = vpop.f32.mrf.mxu0 }
 0x40d   :  { %v2829_v24 = vadd.f32 %v2828_v23, %v2639_v21  ;;  %v2841_v25 = vpop.f32.mrf.mxu1 }
 0x40e   :  { %v2842_v26 = vadd.f32 %v2841_v25, %v2640_v22 }
 0x40f   :  { %5081 = vtanh.f32 %v2829_v24 }
 0x410   :  { %5083 = vtanh.f32 %v2842_v26 }
 0x412   :  { %v2815_v29 = vpop.f32.mrf.mxu3 }
 0x413   :  { %v2816_v30 = vadd.f32 %v2815_v29, %v2638_v27  ;;  %v2854_v32 = vpop.f32.mrf.mxu2 }
 0x414   :  { %v2855_v33 = vadd.f32 %v2854_v32, %v2641_v28  ;;  %v2830_v34 = vpop.f32.mrf.mxu0 }
 0x415   :  { %v5082_v35 = vpop.eup %5081  ;;  %5085 = vtanh.f32 %v2816_v30  ;;  %v2843_v36 = vpop.f32.mrf.mxu1 }
 0x416   :  { %v5084_v37 = vpop.eup %5083  ;;  %v2863_v38 = vpack.c.bf16 %v5082_v35, %v5082_v35  ;;  %5087 = vtanh.f32 %v2855_v33 }
 0x417   :  { %v2864_v39 = vpack.c.bf16 %v5084_v37, %v5084_v37 }
 0x418   :  { %3147 = vmatmul.bf16.vlgmr.msrb.gmra.mxu0 %v2863_v38 }
 0x419   :  { %3160 = vmatmul.bf16.vlgmr.msrb.gmra.mxu1 %v2864_v39 }
 0x41a   :  { %v2817_v8 = vpop.f32.mrf.mxu3 }
 0x41b   :  { %v5086_v60 = vpop.eup %5085  ;;  %v2856_v40 = vpop.f32.mrf.mxu2 }
 0x41c   :  { %v5088_v41 = vpop.eup %5087  ;;  %v2862_v42 = vpack.c.bf16 %v5086_v60, %v5086_v60 }
 0x41d   :  { %v2865_v59 = vpack.c.bf16 %v5088_v41, %v5088_v41 }
 0x41e   :  { %3134 = vmatmul.bf16.vlgmr.msra.gmra.mxu3 %v2862_v42 }
 0x41f   :  { %3173 = vmatmul.bf16.vlgmr.msrb.gmra.mxu2 %v2865_v59 }
 0x495   :  { %v3148_v44 = vpop.f32.mrf.mxu0 }
 0x496   :  { %v3161_v55 = vpop.f32.mrf.mxu1 }
 0x49d   :  { %v3150_v0 = vpop.f32.mrf.mxu0 }
 0x49e   :  { %v3163_v45 = vpop.f32.mrf.mxu1 }
 0x4a1   :  { %v3135_v47 = vpop.f32.mrf.mxu3 }
 0x4a2   :  { %v3136_v48 = vadd.f32 %v5064_v46, %v3135_v47  ;;  %v3174_v49 = vpop.f32.mrf.mxu2 }
 0x4a4   :  { %v3149_v51 = vadd.f32 %v3148_v44, %v3136_v48 }
 0x4a6   :  { %v3162_v52 = vadd.f32 %v3161_v55, %v3149_v51 }
 0x4a8   :  { %v3175_v43 = vadd.f32 %v3174_v49, %v3162_v52 }
 0x4a9   :  { %v3137_v53 = vpop.f32.mrf.mxu3 }
 0x4aa   :  { %5089 = vtanh.f32 %v3175_v43  ;;  %v3176_v54 = vpop.f32.mrf.mxu2 }
 0x4b0   :  { %v5090_v50 = vpop.eup %5089 }
 0x4b1   :  { %3180 = vst.msk [vmem:[%s7250_s13] sm:$0xff] %vm3179_vm1, %v5090_v50 }

</bundles_post_ra>
